<compile_context>
chip_gen: v6e
topology: v6e:2x2x1
jax: 0.10.0
libtpu: 0.0.40
codegen_flags: <defaults>
</compile_context>

<pallas_src>
import numpy as np
import jax
import jax.numpy as jnp
from jax.experimental import pallas as pl
from jax.experimental.pallas import tpu as pltpu

N = 10              # "n" from the PyTorch module
ONE_HOT = 8         # conv in-channels
KSIZE = 3           # conv kernel size
P = N * N           # flattened spatial size (100)
CP = ONE_HOT * P    # flattened input feature size (800)
LANES = 128         # lane-dense working width for conv output / fc / output
W_ROWS = CP + LANES + 8   # packed weight rows: Wc(800) + Wblk(128) + bias slab(8)

BATCH = 256         # example batch (kernel handles any B)
BBLK = 128          # samples per grid step (fills MXU M dim / sublanes)

APPROX_SIGMOID = True   # False -> exact jax.nn.sigmoid (tighter tolerances)


def rna_cnn_kernel(x_ref, w_ref, mask_ref, out_ref):
    """Fused conv2d(8->1,3x3,'same') + relu + linear(n,n) + sigmoid + mask.

    x_ref    : (BBLK, 800) flattened NCHW input block, VMEM f32
    w_ref    : (936, 128)  packed constants, VMEM f32
                 rows [0,800)   : conv-as-GEMM weight (cols 100..127 zero)
                 rows [800,928) : block-diag fc weight kron(I_n, wfc^T) (zero-padded)
                 row  928       : conv bias broadcast over lanes
                 row  929       : tiled fc bias (lanes 0..99), zeros elsewhere
    mask_ref : (BBLK, 128) mask, zero-padded to 128 lanes, VMEM f32
    out_ref  : (BBLK, 128) output, VMEM f32
    """
    wc = w_ref[0:CP, :]                           # (800, 128)  aligned static slice
    wblk = w_ref[CP:CP + LANES, :]                # (128, 128)  aligned static slice
    bias = w_ref[CP + LANES:CP + LANES + 8, :]    # (8, 128)    aligned static slice
    bconv_row = bias[0:1, :]                      # (1, 128)
    bfc_row = bias[1:2, :]                        # (1, 128)

    # conv2d(8->1, 3x3, 'same') as one MXU dot; squeeze(1) is implicit.
    h = jnp.dot(x_ref[...], wc, preferred_element_type=jnp.float32) + bconv_row
    h = jnp.maximum(h, 0.0)                       # ReLU

    # fc1: Linear(n, n) over the last spatial axis as one lane-dense MXU dot
    # against the block-diagonal weight (no in-kernel reshape).
    y = jnp.dot(h, wblk, preferred_element_type=jnp.float32) + bfc_row

    # sigmoid
    if APPROX_SIGMOID:
        t = jnp.exp(-jnp.abs(y))                  # in (0, 1]: no overflow
        inv = pl.reciprocal(1.0 + t, approx=True) # EUP vrcp
        y = jnp.where(y >= 0.0, inv, t * inv)
    else:
        y = jax.nn.sigmoid(y)

    # mask (pad lanes 100..127 of the mask are zero -> output pad lanes are 0)
    out_ref[...] = y * mask_ref[...]


def prepare_params(wconv, bconv, wfc, bfc):
    """One-time weight-layout transform (call once, outside the jitted forward).

    Returns the packed (936, 128) constant array consumed by the kernel.
    """
    wconv = np.asarray(wconv, np.float32)   # (1, C, 3, 3)
    bconv = np.asarray(bconv, np.float32)   # (1,)
    wfc = np.asarray(wfc, np.float32)       # (n, n)  (out, in)
    bfc = np.asarray(bfc, np.float32)       # (n,)

    # conv-as-GEMM weight: column oi*n+oj holds the 3x3x8 stencil of that
    # output pixel; 'same' zero padding is realised by simply omitting
    # out-of-image taps.
    wc = np.zeros((CP, LANES), np.float32)
    for c in range(ONE_HOT):
        for oi in range(N):
            for oj in range(N):
                for di in range(-1, 2):
                    for dj in range(-1, 2):
                        ii, jj = oi + di, oj + dj
                        if 0 <= ii < N and 0 <= jj < N:
                            wc[c * P + ii * N + jj, oi * N + oj] = \
                                wconv[0, c, di + 1, dj + 1]

    # fc1 applied over the last axis of (B, n, n)  ==  lane-dense
    # (B, n*n) @ kron(I_n, wfc^T); rows/cols 100..127 zero.
    wblk = np.zeros((LANES, LANES), np.float32)
    wblk[:P, :P] = np.kron(np.eye(N, dtype=np.float32), wfc.T)

    # bias slab (8 rows for sublane alignment): row 0 conv bias, row 1 fc bias.
    bias = np.zeros((8, LANES), np.float32)
    bias[0, :] = bconv[0]
    bias[1, :P] = np.tile(bfc, N)

    return jnp.asarray(np.concatenate([wc, wblk, bias], axis=0))  # (936, 128)


@jax.jit
def rna_cnn_masked(x, mask, w_packed):
    """x: (B, 8, n, n) NCHW f32; mask: (B, n, n) f32; w_packed: prepare_params()."""
    B = x.shape[0]

    # Layout plumbing only (contiguous reshapes; mask pad is 512 B/sample).
    x_flat = x.reshape(B, CP).astype(jnp.float32)
    mask_pad = jnp.pad(mask.reshape(B, P).astype(jnp.float32),
                       ((0, 0), (0, LANES - P)))

    nblk = pl.cdiv(B, BBLK)
    Bp = nblk * BBLK
    if Bp != B:   # pad batch up to a whole number of blocks
        x_flat = jnp.pad(x_flat, ((0, Bp - B), (0, 0)))
        mask_pad = jnp.pad(mask_pad, ((0, Bp - B), (0, 0)))

    out_pad = pl.pallas_call(
        rna_cnn_kernel,
        out_shape=jax.ShapeDtypeStruct((Bp, LANES), jnp.float32),
        grid_spec=pltpu.PrefetchScalarGridSpec(
            num_scalar_prefetch=0,
            grid=(nblk,),
            in_specs=[
                pl.BlockSpec((BBLK, CP), lambda b: (b, 0)),        # x block
                pl.BlockSpec((W_ROWS, LANES), lambda b: (0, 0)),   # constants (fetched once)
                pl.BlockSpec((BBLK, LANES), lambda b: (b, 0)),     # mask block
            ],
            out_specs=pl.BlockSpec((BBLK, LANES), lambda b: (b, 0)),
        ),
        compiler_params=pltpu.CompilerParams(
            dimension_semantics=("parallel",),      # batch blocks -> v7x's 2 TCs
        ),
        cost_estimate=pl.CostEstimate(
            flops=2 * Bp * (CP * LANES + LANES * LANES),
            transcendentals=Bp * LANES,
            bytes_accessed=4 * (Bp * CP + 2 * Bp * LANES + W_ROWS * LANES),
        ),
    )(x_flat, w_packed, mask_pad)

    return out_pad[:B, :P].reshape(B, N, N)


def reference(x, mask, wconv, bconv, wfc, bfc):
    """Pure-JAX reference mirroring the PyTorch forward."""
    y = jax.lax.conv_general_dilated(
        x, wconv, window_strides=(1, 1), padding='SAME',
        dimension_numbers=('NCHW', 'OIHW', 'NCHW'))
    y = y + bconv.reshape(1, -1, 1, 1)
    y = y[:, 0]                       # squeeze(1)
    y = jnp.maximum(y, 0.0)           # relu
    y = y @ wfc.T + bfc               # fc1 over last dim
    y = jax.nn.sigmoid(y)
    return y * mask


if __name__ == "__main__":
    key = jax.random.PRNGKey(0)
    k_x, k_m, k_wc, k_bc, k_wf, k_bf = jax.random.split(key, 6)

    # Example inputs: (B, one_hot_dim, n, n) and mask (B, n, n)
    x = jax.random.normal(k_x, (BATCH, ONE_HOT, N, N), dtype=jnp.float32)
    mask = jax.random.bernoulli(k_m, 0.5, (BATCH, N, N)).astype(jnp.float32)

    # Deterministic parameter init (shapes from the module's __init__)
    wconv = 0.1 * jax.random.normal(k_wc, (1, ONE_HOT, KSIZE, KSIZE), dtype=jnp.float32)
    bconv = 0.1 * jax.random.normal(k_bc, (1,), dtype=jnp.float32)
    wfc = 0.1 * jax.random.normal(k_wf, (N, N), dtype=jnp.float32)
    bfc = 0.1 * jax.random.normal(k_bf, (N,), dtype=jnp.float32)

    # One-time weight-layout transform (hoisted out of the jitted forward).
    w_packed = prepare_params(wconv, bconv, wfc, bfc)

    out = jax.block_until_ready(rna_cnn_masked(x, mask, w_packed))
    ref = jax.block_until_ready(reference(x, mask, wconv, bconv, wfc, bfc))

    assert out.shape == (BATCH, N, N)
    assert jnp.allclose(out, ref, atol=1e-2, rtol=1e-2), "mismatch vs reference"

    print("KERNEL_OK")
</pallas_src>

<mosaic_0001>
module attributes {stable_mosaic.version = 11 : i64} {
  func.func @rna_cnn_kernel(%arg0: i32, %arg1: memref<128x800xf32, #tpu.memory_space<vmem>>, %arg2: memref<936x128xf32, #tpu.memory_space<vmem>>, %arg3: memref<128x128xf32, #tpu.memory_space<vmem>>, %arg4: memref<128x128xf32, #tpu.memory_space<vmem>>) attributes {dimension_semantics = [#tpu.dimension_semantics<parallel>], iteration_bounds = array<i64: 2>, scalar_prefetch = 0 : i64, scratch_operands = 0 : i64, tpu.core_type = #tpu.core_type<tc>, window_params = [{transform_indices = @transform_0, window_bounds = array<i64: 128, 800>}, {pipeline_mode = #tpu.pipeline_mode<synchronous>, transform_indices = @transform_1, window_bounds = array<i64: 936, 128>}, {transform_indices = @transform_2, window_bounds = array<i64: 128, 128>}, {transform_indices = @transform_3, window_bounds = array<i64: 128, 128>}]} {
    %c0 = arith.constant 0 : index
    %c0_0 = arith.constant 0 : index
    %0 = vector.load %arg2[%c0, %c0_0] : memref<936x128xf32, #tpu.memory_space<vmem>>, vector<800x128xf32>
    %c800 = arith.constant 800 : index
    %c0_1 = arith.constant 0 : index
    %1 = vector.load %arg2[%c800, %c0_1] : memref<936x128xf32, #tpu.memory_space<vmem>>, vector<128x128xf32>
    %c928 = arith.constant 928 : index
    %c0_2 = arith.constant 0 : index
    %2 = vector.load %arg2[%c928, %c0_2] : memref<936x128xf32, #tpu.memory_space<vmem>>, vector<8x128xf32>
    %3 = vector.extract_strided_slice %2 {offsets = [0, 0], sizes = [1, 128], strides = [1, 1]} : vector<8x128xf32> to vector<1x128xf32>
    %4 = vector.extract_strided_slice %2 {offsets = [1, 0], sizes = [1, 128], strides = [1, 1]} : vector<8x128xf32> to vector<1x128xf32>
    %c0_3 = arith.constant 0 : index
    %c0_4 = arith.constant 0 : index
    %5 = vector.load %arg1[%c0_3, %c0_4] : memref<128x800xf32, #tpu.memory_space<vmem>>, vector<128x800xf32>
    %cst = arith.constant dense<0.000000e+00> : vector<128x128xf32>
    %6 = tpu.matmul %5, %0, %cst {dimension_numbers = #tpu.dot_dimension_numbers<[1], [0], [0], [1], [0, 0, 1, 1], [], []>} : vector<128x800xf32>, vector<800x128xf32>, vector<128x128xf32> -> vector<128x128xf32>
    %7 = vector.broadcast %3 : vector<1x128xf32> to vector<128x128xf32>
    %8 = arith.addf %6, %7 : vector<128x128xf32>
    %cst_5 = arith.constant 0.000000e+00 : f32
    %9 = vector.broadcast %cst_5 : f32 to vector<128x128xf32>
    %10 = arith.maximumf %8, %9 : vector<128x128xf32>
    %cst_6 = arith.constant dense<0.000000e+00> : vector<128x128xf32>
    %11 = tpu.matmul %10, %1, %cst_6 {dimension_numbers = #tpu.dot_dimension_numbers<[1], [0], [0], [1], [0, 0, 1, 1], [], []>} : vector<128x128xf32>, vector<128x128xf32>, vector<128x128xf32> -> vector<128x128xf32>
    %12 = vector.broadcast %4 : vector<1x128xf32> to vector<128x128xf32>
    %13 = arith.addf %11, %12 : vector<128x128xf32>
    %14 = math.absf %13 : vector<128x128xf32>
    %cst_7 = arith.constant 0.000000e+00 : f32
    %15 = vector.broadcast %cst_7 : f32 to vector<128x128xf32>
    %16 = arith.subf %15, %14 : vector<128x128xf32>
    %17 = math.exp %16 : vector<128x128xf32>
    %cst_8 = arith.constant 1.000000e+00 : f32
    %18 = vector.broadcast %cst_8 : f32 to vector<128x128xf32>
    %19 = arith.addf %18, %17 : vector<128x128xf32>
    %20 = tpu.reciprocal %19 {approx = true} : vector<128x128xf32> -> vector<128x128xf32>
    %cst_9 = arith.constant 0.000000e+00 : f32
    %21 = vector.broadcast %cst_9 : f32 to vector<128x128xf32>
    %22 = arith.cmpf oge, %13, %21 : vector<128x128xf32>
    %23 = arith.mulf %17, %20 : vector<128x128xf32>
    %24 = arith.select %22, %20, %23 : vector<128x128xi1>, vector<128x128xf32>
    %c0_10 = arith.constant 0 : index
    %c0_11 = arith.constant 0 : index
    %25 = vector.load %arg3[%c0_10, %c0_11] : memref<128x128xf32, #tpu.memory_space<vmem>>, vector<128x128xf32>
    %26 = arith.mulf %24, %25 : vector<128x128xf32>
    %c0_12 = arith.constant 0 : index
    %c0_13 = arith.constant 0 : index
    %27 = vector.load %arg4[%c0_12, %c0_13] : memref<128x128xf32, #tpu.memory_space<vmem>>, vector<128x128xf32>
    tpu.vector_store %arg4[%c0_12, %c0_13], %26 {strides = array<i32>} : memref<128x128xf32, #tpu.memory_space<vmem>>, vector<128x128xf32>,
    return
  }
  func.func @transform_0(%arg0: i32) -> (i32, i32) {
    %c0_i32 = arith.constant 0 : i32
    %c0_i32_0 = arith.constant 0 : i32
    return %arg0, %c0_i32 : i32, i32
  }
  func.func @transform_1(%arg0: i32) -> (i32, i32) {
    %c0_i32 = arith.constant 0 : i32
    %c0_i32_0 = arith.constant 0 : i32
    %c0_i32_1 = arith.constant 0 : i32
    return %c0_i32, %c0_i32_0 : i32, i32
  }
  func.func @transform_2(%arg0: i32) -> (i32, i32) {
    %c0_i32 = arith.constant 0 : i32
    %c0_i32_0 = arith.constant 0 : i32
    return %arg0, %c0_i32 : i32, i32
  }
  func.func @transform_3(%arg0: i32) -> (i32, i32) {
    %c0_i32 = arith.constant 0 : i32
    %c0_i32_0 = arith.constant 0 : i32
    return %arg0, %c0_i32 : i32, i32
  }
}

</mosaic_0001>

<bundles_post_ra>
// kernel: rna_cnn_masked.1
= control target key start
LH: loop header
LB: loop body
LE: loop exit
PB: predicated region body
PF: predicated region fallthrough
CT: control target
= control target key end

     0   :  { %s1996_s12 = smov 0   ;;  %s2862_s0 = inlined_call_operand.vmem [shape: f32[256,800], index: 0, kind: input, shape index: {}]   ;;  %s2863_s1 = inlined_call_operand.vmem [shape: f32[936,128], index: 1, kind: input, shape index: {}]   ;;  %s2864_s2 = inlined_call_operand.vmem [shape: f32[256,128], index: 2, kind: input, shape index: {}]   ;;  %s2865_s3 = inlined_call_operand.vmem [shape: f32[256,128], index: 3, kind: output, shape index: {}]  }
   0x1 LB: > { %s1486_s13 = sadd.s32 4294967295, %s1974_s12   ;;  %p1490_p0 = scmp.ge.s32.totalorder %s1974_s12, 1  ;;  %s1974_s12 = sphi %s1996_s12, %s13_s12  }
   0x2   : > { %p150_p1 = scmp.lt.s32.totalorder %s1974_s12, 3 }
   0x4   : > { %p151_p2 = pnand %p1490_p0, %p150_p1 }
   0x6   : > { %154 = sbr.rel (%p151_p2) target bundleno = 612 (0x264), region = 32 }
   0xb   : > { %v230_v0 = vld [vmem:[%s2863_s1 + $0xf8] sm:$0xff]  ;;  %v229_v2 = vld [vmem:[%s2863_s1 + $0xf0] sm:$0xff]  ;;  %v228_v6 = vld [vmem:[%s2863_s1 + $0xe8] sm:$0xff]  ;;  %s2081_s14 = sshll.u32 %s1486_s13, 4  ;;  %vm432_vm0 = vcmask 261120  }
   0xc   : > { %v214_v1 = vld [vmem:[%s2863_s1 + $0x78] sm:$0xff]  ;;  %1515 = vmatprep.subr.mxu0 %v230_v0  ;;  %v213_v4 = vld [vmem:[%s2863_s1 + $0x70] sm:$0xff]  ;;  %v212_v8 = vld [vmem:[%s2863_s1 + $0x68] sm:$0xff]  ;;  %p181_p3 = scmp.lt.s32.totalorder %s2081_s14, 31 }
   0xd   : > { %v262_v3 = vld [vmem:[%s2863_s1 + $0x1f8] sm:$0xff]  ;;  %1516 = vmatpush3.msra.mxu0 %v214_v1  ;;  %v261_v7 = vld [vmem:[%s2863_s1 + $0x1f0] sm:$0xff]  ;;  %v260_v10 = vld [vmem:[%s2863_s1 + $0x1e8] sm:$0xff] }
   0xe   : > { %v246_v5 = vld [vmem:[%s2863_s1 + $0x178] sm:$0xff]  ;;  %1595 = vmatprep.subr.mxu1 %v262_v3  ;;  %1517 = vmatprep.subr.mxu0 %v229_v2  ;;  %v245_v9 = vld [vmem:[%s2863_s1 + $0x170] sm:$0xff]  ;;  %v227_v11 = vld [vmem:[%s2863_s1 + $0xe0] sm:$0xff]  ;;  %s2899_s14 = smov (!%p181_p3, %s2081_s14), 31 }
   0xf   : > { %1596 = vmatpush3.msra.mxu1 %v246_v5  ;;  %1518 = vmatpush3.msra.mxu0 %v213_v4  ;;  %v244_v12 = vld [vmem:[%s2863_s1 + $0x168] sm:$0xff]  ;;  %v211_v13 = vld [vmem:[%s2863_s1 + $0x60] sm:$0xff]  ;;  %v226_v15 = vld [vmem:[%s2863_s1 + $0xd8] sm:$0xff]  ;;  %s1895_s6 = smul.u32 56, %s2899_s14  ;;  %s1494_s4 = sshll.u32 %s2899_s14, 3 }
  0x10   : > { %1597 = vmatprep.subr.mxu1 %v261_v7  ;;  %1519 = vmatprep.subr.mxu0 %v228_v6  ;;  %v259_v14 = vld [vmem:[%s2863_s1 + $0x1e0] sm:$0xff]  ;;  %v210_v17 = vld [vmem:[%s2863_s1 + $0x58] sm:$0xff]  ;;  %v225_v19 = vld [vmem:[%s2863_s1 + $0xd0] sm:$0xff]  ;;  %s2773_s9 = scalar_lea.vmem %s2865_s3, %s1494_s4 }
  0x11   : > { %1598 = vmatpush3.msra.mxu1 %v245_v9  ;;  %1520 = vmatpush3.msra.mxu0 %v212_v8  ;;  %v243_v16 = vld [vmem:[%s2863_s1 + $0x160] sm:$0xff]  ;;  %v258_v18 = vld [vmem:[%s2863_s1 + $0x1d8] sm:$0xff]  ;;  %v209_v21 = vld [vmem:[%s2863_s1 + $0x50] sm:$0xff]  ;;  %s2183_s27 = scalar_lea.vmem %s2862_s0, %s1895_s6  ;;  %s2759_s6 = scalar_lea.vmem %s2864_s2, %s1494_s4 }
  0x12   : > { %1599 = vmatprep.subr.mxu1 %v260_v10  ;;  %1521 = vmatprep.subr.mxu0 %v227_v11  ;;  %v242_v20 = vld [vmem:[%s2863_s1 + $0x158] sm:$0xff]  ;;  %v257_v22 = vld [vmem:[%s2863_s1 + $0x1d0] sm:$0xff]  ;;  %v224_v23 = vld [vmem:[%s2863_s1 + $0xc8] sm:$0xff] }
  0x13   : > { %1600 = vmatpush3.msra.mxu1 %v244_v12  ;;  %1522 = vmatpush3.msra.mxu0 %v211_v13  ;;  %v241_v24 = vld [vmem:[%s2863_s1 + $0x150] sm:$0xff]  ;;  %v208_v25 = vld [vmem:[%s2863_s1 + $0x48] sm:$0xff]  ;;  %v223_v27 = vld [vmem:[%s2863_s1 + $0xc0] sm:$0xff] }
  0x14   : > { %1601 = vmatprep.subr.mxu1 %v259_v14  ;;  %1523 = vmatprep.subr.mxu0 %v226_v15  ;;  %v256_v26 = vld [vmem:[%s2863_s1 + $0x1c8] sm:$0xff]  ;;  %v207_v29 = vld [vmem:[%s2863_s1 + $0x40] sm:$0xff]  ;;  %v222_v31 = vld [vmem:[%s2863_s1 + $0xb8] sm:$0xff] }
  0x15   : > { %1602 = vmatpush3.msra.mxu1 %v243_v16  ;;  %1524 = vmatpush3.msra.mxu0 %v210_v17  ;;  %v240_v28 = vld [vmem:[%s2863_s1 + $0x148] sm:$0xff]  ;;  %v255_v30 = vld [vmem:[%s2863_s1 + $0x1c0] sm:$0xff]  ;;  %v206_v33 = vld [vmem:[%s2863_s1 + $0x38] sm:$0xff] }
  0x16   : > { %1603 = vmatprep.subr.mxu1 %v258_v18  ;;  %1525 = vmatprep.subr.mxu0 %v225_v19  ;;  %v239_v32 = vld [vmem:[%s2863_s1 + $0x140] sm:$0xff]  ;;  %v254_v34 = vld [vmem:[%s2863_s1 + $0x1b8] sm:$0xff]  ;;  %v221_v35 = vld [vmem:[%s2863_s1 + $0xb0] sm:$0xff] }
  0x17   : > { %1604 = vmatpush3.msra.mxu1 %v242_v20  ;;  %1526 = vmatpush3.msra.mxu0 %v209_v21  ;;  %v238_v36 = vld [vmem:[%s2863_s1 + $0x138] sm:$0xff]  ;;  %v205_v37 = vld [vmem:[%s2863_s1 + $0x30] sm:$0xff]  ;;  %v220_v39 = vld [vmem:[%s2863_s1 + $0xa8] sm:$0xff] }
  0x18   : > { %1605 = vmatprep.subr.mxu1 %v257_v22  ;;  %1527 = vmatprep.subr.mxu0 %v224_v23  ;;  %v253_v38 = vld [vmem:[%s2863_s1 + $0x1b0] sm:$0xff]  ;;  %v204_v41 = vld [vmem:[%s2863_s1 + $0x28] sm:$0xff]  ;;  %v219_v43 = vld [vmem:[%s2863_s1 + $0xa0] sm:$0xff] }
  0x19   : > { %1606 = vmatpush3.msra.mxu1 %v241_v24  ;;  %1528 = vmatpush3.msra.mxu0 %v208_v25  ;;  %v237_v40 = vld [vmem:[%s2863_s1 + $0x130] sm:$0xff]  ;;  %v252_v42 = vld [vmem:[%s2863_s1 + $0x1a8] sm:$0xff]  ;;  %v203_v45 = vld [vmem:[%s2863_s1 + $0x20] sm:$0xff] }
  0x1a   : > { %1607 = vmatprep.subr.mxu1 %v256_v26  ;;  %1529 = vmatprep.subr.mxu0 %v223_v27  ;;  %v236_v44 = vld [vmem:[%s2863_s1 + $0x128] sm:$0xff]  ;;  %v251_v46 = vld [vmem:[%s2863_s1 + $0x1a0] sm:$0xff]  ;;  %v218_v47 = vld [vmem:[%s2863_s1 + $0x98] sm:$0xff] }
  0x1b   : > { %1608 = vmatpush3.msra.mxu1 %v240_v28  ;;  %1530 = vmatpush3.msra.mxu0 %v207_v29  ;;  %v235_v48 = vld [vmem:[%s2863_s1 + $0x120] sm:$0xff]  ;;  %v202_v49 = vld [vmem:[%s2863_s1 + $0x18] sm:$0xff]  ;;  %v217_v51 = vld [vmem:[%s2863_s1 + $0x90] sm:$0xff] }
  0x1c   : > { %1609 = vmatprep.subr.mxu1 %v255_v30  ;;  %1531 = vmatprep.subr.mxu0 %v222_v31  ;;  %v250_v50 = vld [vmem:[%s2863_s1 + $0x198] sm:$0xff]  ;;  %v201_v53 = vld [vmem:[%s2863_s1 + $0x10] sm:$0xff]  ;;  %v216_v55 = vld [vmem:[%s2863_s1 + $0x88] sm:$0xff] }
  0x1d   : > { %1610 = vmatpush3.msra.mxu1 %v239_v32  ;;  %1532 = vmatpush3.msra.mxu0 %v206_v33  ;;  %v234_v52 = vld [vmem:[%s2863_s1 + $0x118] sm:$0xff]  ;;  %v249_v54 = vld [vmem:[%s2863_s1 + $0x190] sm:$0xff]  ;;  %v200_v57 = vld [vmem:[%s2863_s1 + $0x8] sm:$0xff] }
  0x1e   : > { %1611 = vmatprep.subr.mxu1 %v254_v34  ;;  %1533 = vmatprep.subr.mxu0 %v221_v35  ;;  %v233_v56 = vld [vmem:[%s2863_s1 + $0x110] sm:$0xff]  ;;  %v248_v58 = vld [vmem:[%s2863_s1 + $0x188] sm:$0xff]  ;;  %v215_v59 = vld [vmem:[%s2863_s1 + $0x80] sm:$0xff] }
  0x1f   : > { %1612 = vmatpush3.msra.mxu1 %v238_v36  ;;  %1534 = vmatpush3.msra.mxu0 %v205_v37  ;;  %v317_v60 = vld [vmem:[%s2183_s27 + $0x8] sm:$0xff]  ;;  %v199_v61 = vld [vmem:[%s2863_s1] sm:$0xff]  ;;  %v294_v1 = vld [vmem:[%s2863_s1 + $0x2f8] sm:$0xff] }
  0x20   : > { %1613 = vmatprep.subr.mxu1 %v253_v38  ;;  %1535 = vmatprep.subr.mxu0 %v220_v39  ;;  %v232_v62 = vld [vmem:[%s2863_s1 + $0x108] sm:$0xff]  ;;  %v316_v63 = vld [vmem:[%s2183_s27] sm:$0xff]  ;;  %v319_v3 = vld [vmem:[%s2183_s27 + $0x18] sm:$0xff] }
  0x21   : > { %1614 = vmatpush3.msra.mxu1 %v237_v40  ;;  %1536 = vmatpush3.msra.mxu0 %v204_v41  ;;  %v247_v0 = vld [vmem:[%s2863_s1 + $0x180] sm:$0xff]  ;;  %v278_v4 = vld [vmem:[%s2863_s1 + $0x278] sm:$0xff]  ;;  %v318_v5 = vld [vmem:[%s2183_s27 + $0x10] sm:$0xff] }
  0x22   : > { %1615 = vmatprep.subr.mxu1 %v252_v42  ;;  %1537 = vmatprep.subr.mxu0 %v219_v43  ;;  %v231_v2 = vld [vmem:[%s2863_s1 + $0x100] sm:$0xff]  ;;  %v323_v7 = vld [vmem:[%s2183_s27 + $0x38] sm:$0xff]  ;;  %v293_v8 = vld [vmem:[%s2863_s1 + $0x2f0] sm:$0xff] }
  0x23   : > { %1616 = vmatpush3.msra.mxu1 %v236_v44  ;;  %1538 = vmatpush3.msra.mxu0 %v203_v45  ;;  %v324_v6 = vld [vmem:[%s2183_s27 + $0x40] sm:$0xff]  ;;  %v326_v9 = vld [vmem:[%s2183_s27 + $0x50] sm:$0xff]  ;;  %v331_v11 = vld [vmem:[%s2183_s27 + $0x78] sm:$0xff] }
  0x24   : > { %1617 = vmatprep.subr.mxu1 %v251_v46  ;;  %1539 = vmatprep.subr.mxu0 %v218_v47  ;;  %v277_v10 = vld [vmem:[%s2863_s1 + $0x270] sm:$0xff]  ;;  %v292_v12 = vld [vmem:[%s2863_s1 + $0x2e8] sm:$0xff]  ;;  %v291_v18 = vld [vmem:[%s2863_s1 + $0x2e0] sm:$0xff] }
  0x25   : > { %1618 = vmatpush3.msra.mxu1 %v235_v48  ;;  %1540 = vmatpush3.msra.mxu0 %v202_v49  ;;  %v325_v13 = vld [vmem:[%s2183_s27 + $0x48] sm:$0xff]  ;;  %v330_v15 = vld [vmem:[%s2183_s27 + $0x70] sm:$0xff]  ;;  %v275_v19 = vld [vmem:[%s2863_s1 + $0x260] sm:$0xff] }
  0x26   : > { %1619 = vmatprep.subr.mxu1 %v250_v50  ;;  %1541 = vmatprep.subr.mxu0 %v217_v51  ;;  %v276_v14 = vld [vmem:[%s2863_s1 + $0x268] sm:$0xff]  ;;  %v338_v17 = vld [vmem:[%s2183_s27 + $0xb0] sm:$0xff]  ;;  %v298_v20 = vld [vmem:[%s2863_s1 + $0x318] sm:$0xff] }
  0x27   : > { %1620 = vmatpush3.msra.mxu1 %v234_v52  ;;  %1542 = vmatpush3.msra.mxu0 %v201_v53  ;;  %v333_v16 = vld [vmem:[%s2183_s27 + $0x88] sm:$0xff]  ;;  %v332_v21 = vld [vmem:[%s2183_s27 + $0x80] sm:$0xff]  ;;  %v290_v22 = vld [vmem:[%s2863_s1 + $0x2d8] sm:$0xff] }
  0x28   : > { %1621 = vmatprep.subr.mxu1 %v249_v54  ;;  %1543 = vmatprep.subr.mxu0 %v216_v55  ;;  %v337_v23 = vld [vmem:[%s2183_s27 + $0xa8] sm:$0xff]  ;;  %v340_v24 = vld [vmem:[%s2183_s27 + $0xc0] sm:$0xff]  ;;  %v274_v26 = vld [vmem:[%s2863_s1 + $0x258] sm:$0xff] }
  0x29   : > { %1622 = vmatpush3.msra.mxu1 %v233_v56  ;;  %1544 = vmatpush3.msra.mxu0 %v200_v57  ;;  %v345_v25 = vld [vmem:[%s2183_s27 + $0xe8] sm:$0xff]  ;;  %v289_v27 = vld [vmem:[%s2863_s1 + $0x2d0] sm:$0xff]  ;;  %v339_v28 = vld [vmem:[%s2183_s27 + $0xb8] sm:$0xff] }
  0x2a   : > { %1623 = vmatprep.subr.mxu1 %v248_v58  ;;  %1545 = vmatprep.subr.mxu0 %v215_v59  ;;  %v273_v29 = vld [vmem:[%s2863_s1 + $0x250] sm:$0xff]  ;;  %v344_v30 = vld [vmem:[%s2183_s27 + $0xe0] sm:$0xff]  ;;  %v347_v31 = vld [vmem:[%s2183_s27 + $0xf8] sm:$0xff] }
  0x2b   : > { %545 = vmatprep.mubr.f32.mxu0 %v317_v60  ;;  %1546 = vmatpush3.msra.mxu0 %v199_v61  ;;  %v352_v32 = vld [vmem:[%s2183_s27 + $0x120] sm:$0xff]  ;;  %v288_v33 = vld [vmem:[%s2863_s1 + $0x2c8] sm:$0xff]  ;;  %v297_v35 = vld [vmem:[%s2863_s1 + $0x310] sm:$0xff] }
  0x2c   : > { %1624 = vmatpush3.msra.mxu1 %v232_v62  ;;  %546 = vmatmul.mubr.f32.vlgmr.msra.gmra.mxu0 %v316_v63  ;;  %v272_v34 = vld [vmem:[%s2863_s1 + $0x248] sm:$0xff]  ;;  %v346_v36 = vld [vmem:[%s2183_s27 + $0xf0] sm:$0xff]  ;;  %v287_v37 = vld [vmem:[%s2863_s1 + $0x2c0] sm:$0xff] }
  0x2d   : > { %1625 = vmatprep.subr.mxu1 %v247_v0  ;;  %1675 = vmatprep.subr.mxu0 %v294_v1  ;;  %v351_v38 = vld [vmem:[%s2183_s27 + $0x118] sm:$0xff]  ;;  %v354_v39 = vld [vmem:[%s2183_s27 + $0x130] sm:$0xff]  ;;  %v271_v41 = vld [vmem:[%s2863_s1 + $0x240] sm:$0xff] }
  0x2e   : > { %1626 = vmatpush3.msra.mxu1 %v231_v2  ;;  %690 = vmatprep.mubr.f32.mxu1 %v319_v3  ;;  %v359_v40 = vld [vmem:[%s2183_s27 + $0x158] sm:$0xff]  ;;  %v353_v43 = vld [vmem:[%s2183_s27 + $0x128] sm:$0xff]  ;;  %v358_v45 = vld [vmem:[%s2183_s27 + $0x150] sm:$0xff] }
  0x2f   : > { %1676 = vmatpush3.msra.mxu0 %v278_v4  ;;  %691 = vmatmul.mubr.f32.vlgmr.msra.gmra.mxu1 %v318_v5  ;;  %v286_v42 = vld [vmem:[%s2863_s1 + $0x2b8] sm:$0xff]  ;;  %v361_v46 = vld [vmem:[%s2183_s27 + $0x168] sm:$0xff]  ;;  %v366_v47 = vld [vmem:[%s2183_s27 + $0x190] sm:$0xff] }
  0x30   : > { %550 = vmatprep.mubr.f32.mxu0 %v324_v6  ;;  %1677 = vmatprep.subr.mxu0 %v293_v8  ;;  %v270_v44 = vld [vmem:[%s2863_s1 + $0x238] sm:$0xff]  ;;  %v285_v48 = vld [vmem:[%s2863_s1 + $0x2b0] sm:$0xff]  ;;  %v296_v50 = vld [vmem:[%s2863_s1 + $0x308] sm:$0xff] }
  0x31   : > { %551 = vmatmul.mubr.f32.gmra.mxu0 %v323_v7  ;;  %695 = vmatprep.mubr.f32.mxu1 %v326_v9  ;;  %v269_v49 = vld [vmem:[%s2863_s1 + $0x230] sm:$0xff]  ;;  %v360_v51 = vld [vmem:[%s2183_s27 + $0x160] sm:$0xff]  ;;  %v284_v52 = vld [vmem:[%s2863_s1 + $0x2a8] sm:$0xff] }
  0x32   : > { %1678 = vmatpush3.msra.mxu0 %v277_v10  ;;  %555 = vmatprep.mubr.f32.mxu0 %v331_v11  ;;  %v365_v53 = vld [vmem:[%s2183_s27 + $0x188] sm:$0xff]  ;;  %v368_v54 = vld [vmem:[%s2183_s27 + $0x1a0] sm:$0xff]  ;;  %v367_v58 = vld [vmem:[%s2183_s27 + $0x198] sm:$0xff] }
  0x33   : > { %1679 = vmatprep.subr.mxu0 %v292_v12  ;;  %696 = vmatmul.mubr.f32.gmra.mxu1 %v325_v13  ;;  %v373_v55 = vld [vmem:[%s2183_s27 + $0x1c8] sm:$0xff]  ;;  %v283_v57 = vld [vmem:[%s2863_s1 + $0x2a0] sm:$0xff]  ;;  %v375_v61 = vld [vmem:[%s2183_s27 + $0x1d8] sm:$0xff] }
  0x34   : > { %1680 = vmatpush3.msra.mxu0 %v276_v14  ;;  %700 = vmatprep.mubr.f32.mxu1 %v333_v16  ;;  %v268_v56 = vld [vmem:[%s2863_s1 + $0x228] sm:$0xff]  ;;  %v267_v59 = vld [vmem:[%s2863_s1 + $0x220] sm:$0xff]  ;;  %v282_v63 = vld [vmem:[%s2863_s1 + $0x298] sm:$0xff] }
  0x35   : > { %556 = vmatmul.mubr.f32.gmra.mxu0 %v330_v15  ;;  %1681 = vmatprep.subr.mxu0 %v291_v18  ;;  %v372_v60 = vld [vmem:[%s2183_s27 + $0x1c0] sm:$0xff]  ;;  %v266_v0 = vld [vmem:[%s2863_s1 + $0x218] sm:$0xff]  ;;  %v374_v2 = vld [vmem:[%s2183_s27 + $0x1d0] sm:$0xff] }
  0x36   : > { %560 = vmatprep.mubr.f32.mxu0 %v338_v17  ;;  %1682 = vmatpush3.msra.mxu0 %v275_v19  ;;  %v380_v62 = vld [vmem:[%s2183_s27 + $0x200] sm:$0xff]  ;;  %v281_v3 = vld [vmem:[%s2863_s1 + $0x290] sm:$0xff]  ;;  %v379_v4 = vld [vmem:[%s2183_s27 + $0x1f8] sm:$0xff] }
  0x37   : > { %1807 = vmatprep.subr.mxu1 %v298_v20  ;;  %701 = vmatmul.mubr.f32.gmra.mxu1 %v332_v21  ;;  %v295_v1 = vld [vmem:[%s2863_s1 + $0x300] sm:$0xff]  ;;  %v382_v5 = vld [vmem:[%s2183_s27 + $0x210] sm:$0xff]  ;;  %v387_v6 = vld [vmem:[%s2183_s27 + $0x238] sm:$0xff] }
  0x38   : > { %1683 = vmatprep.subr.mxu0 %v290_v22  ;;  %705 = vmatprep.mubr.f32.mxu1 %v340_v24  ;;  %v265_v7 = vld [vmem:[%s2863_s1 + $0x210] sm:$0xff]  ;;  %v280_v8 = vld [vmem:[%s2863_s1 + $0x288] sm:$0xff]  ;;  %v279_v14 = vld [vmem:[%s2863_s1 + $0x280] sm:$0xff] }
  0x39   : > { %561 = vmatmul.mubr.f32.gmra.mxu0 %v337_v23  ;;  %1808 = vmatpush3.msra.mxu1 %v298_v20  ;;  %v381_v9 = vld [vmem:[%s2183_s27 + $0x208] sm:$0xff]  ;;  %v386_v11 = vld [vmem:[%s2183_s27 + $0x230] sm:$0xff]  ;;  %v263_v15 = vld [vmem:[%s2863_s1 + $0x200] sm:$0xff] }
  0x3a   : > { %565 = vmatprep.mubr.f32.mxu0 %v345_v25  ;;  %1684 = vmatpush3.msra.mxu0 %v274_v26  ;;  %v264_v10 = vld [vmem:[%s2863_s1 + $0x208] sm:$0xff]  ;;  %v394_v13 = vld [vmem:[%s2183_s27 + $0x270] sm:$0xff]  ;;  %v388_v16 = vld [vmem:[%s2183_s27 + $0x240] sm:$0xff] }
  0x3b   : > { %1685 = vmatprep.subr.mxu0 %v289_v27  ;;  %706 = vmatmul.mubr.f32.gmra.mxu1 %v339_v28  ;;  %v389_v12 = vld [vmem:[%s2183_s27 + $0x248] sm:$0xff]  ;;  %v396_v18 = vld [vmem:[%s2183_s27 + $0x280] sm:$0xff]  ;;  %v395_v20 = vld [vmem:[%s2183_s27 + $0x278] sm:$0xff] }
  0x3c   : > { %1686 = vmatpush3.msra.mxu0 %v273_v29  ;;  %710 = vmatprep.mubr.f32.mxu1 %v347_v31  ;;  %v393_v17 = vld [vmem:[%s2183_s27 + $0x268] sm:$0xff]  ;;  %v400_v21 = vld [vmem:[%s2183_s27 + $0x2a0] sm:$0xff]  ;;  %v403_v22 = vld [vmem:[%s2183_s27 + $0x2b8] sm:$0xff] }
  0x3d   : > { %566 = vmatmul.mubr.f32.gmra.mxu0 %v344_v30  ;;  %1687 = vmatprep.subr.mxu0 %v288_v33  ;;  %v401_v19 = vld [vmem:[%s2183_s27 + $0x2a8] sm:$0xff]  ;;  %v408_v23 = vld [vmem:[%s2183_s27 + $0x2e0] sm:$0xff]  ;;  %v402_v24 = vld [vmem:[%s2183_s27 + $0x2b0] sm:$0xff] }
  0x3e   : > { %570 = vmatprep.mubr.f32.mxu0 %v352_v32  ;;  %1688 = vmatpush3.msra.mxu0 %v272_v34  ;;  %v407_v25 = vld [vmem:[%s2183_s27 + $0x2d8] sm:$0xff]  ;;  %v410_v26 = vld [vmem:[%s2183_s27 + $0x2f0] sm:$0xff]  ;;  %v409_v28 = vld [vmem:[%s2183_s27 + $0x2e8] sm:$0xff] }
  0x3f   : > { %1809 = vmatprep.subr.mxu1 %v297_v35  ;;  %711 = vmatmul.mubr.f32.gmra.mxu1 %v346_v36  ;;  %v415_v27 = vld [vmem:[%s2183_s27 + $0x318] sm:$0xff]  ;;  %v414_v29 = vld [vmem:[%s2183_s27 + $0x310] sm:$0xff]  ;;  %v417_v30 = vld [vmem:[%s2183_s27 + $0x328] sm:$0xff] }
  0x40   : > { %1689 = vmatprep.subr.mxu0 %v287_v37  ;;  %715 = vmatprep.mubr.f32.mxu1 %v354_v39  ;;  %v422_v31 = vld [vmem:[%s2183_s27 + $0x350] sm:$0xff]  ;;  %v416_v32 = vld [vmem:[%s2183_s27 + $0x320] sm:$0xff]  ;;  %v421_v33 = vld [vmem:[%s2183_s27 + $0x348] sm:$0xff] }
  0x41   : > { %571 = vmatmul.mubr.f32.gmra.mxu0 %v351_v38  ;;  %1810 = vmatpush3.msra.mxu1 %v297_v35  ;;  %v424_v34 = vld [vmem:[%s2183_s27 + $0x360] sm:$0xff]  ;;  %v321_v35 = vld [vmem:[%s2183_s27 + $0x28] sm:$0xff]  ;;  %v423_v36 = vld [vmem:[%s2183_s27 + $0x358] sm:$0xff] }
  0x42   : > { %575 = vmatprep.mubr.f32.mxu0 %v359_v40  ;;  %1690 = vmatpush3.msra.mxu0 %v271_v41  ;;  %v320_v37 = vld [vmem:[%s2183_s27 + $0x20] sm:$0xff]  ;;  %v322_v38 = vld [vmem:[%s2183_s27 + $0x30] sm:$0xff]  ;;  %v329_v40 = vld [vmem:[%s2183_s27 + $0x68] sm:$0xff] }
  0x43   : > { %1691 = vmatprep.subr.mxu0 %v286_v42  ;;  %716 = vmatmul.mubr.f32.gmra.mxu1 %v353_v43  ;;  %v328_v39 = vld [vmem:[%s2183_s27 + $0x60] sm:$0xff]  ;;  %v327_v41 = vld [vmem:[%s2183_s27 + $0x58] sm:$0xff] }
  0x44   : > { %1692 = vmatpush3.msra.mxu0 %v270_v44  ;;  %720 = vmatprep.mubr.f32.mxu1 %v361_v46  ;;  %v336_v42 = vld [vmem:[%s2183_s27 + $0xa0] sm:$0xff]  ;;  %v335_v43 = vld [vmem:[%s2183_s27 + $0x98] sm:$0xff]  ;;  %v350_v46 = vld [vmem:[%s2183_s27 + $0x110] sm:$0xff] }
  0x45   : > { %576 = vmatmul.mubr.f32.gmra.mxu0 %v358_v45  ;;  %1693 = vmatprep.subr.mxu0 %v285_v48  ;;  %v343_v44 = vld [vmem:[%s2183_s27 + $0xd8] sm:$0xff]  ;;  %v334_v45 = vld [vmem:[%s2183_s27 + $0x90] sm:$0xff]  ;;  %v357_v48 = vld [vmem:[%s2183_s27 + $0x148] sm:$0xff] }
  0x46   : > { %580 = vmatprep.mubr.f32.mxu0 %v366_v47  ;;  %1694 = vmatpush3.msra.mxu0 %v269_v49  ;;  %v342_v47 = vld [vmem:[%s2183_s27 + $0xd0] sm:$0xff]  ;;  %v341_v49 = vld [vmem:[%s2183_s27 + $0xc8] sm:$0xff] }
  0x47   : > { %1811 = vmatprep.subr.mxu1 %v296_v50  ;;  %721 = vmatmul.mubr.f32.gmra.mxu1 %v360_v51  ;;  %v349_v51 = vld [vmem:[%s2183_s27 + $0x108] sm:$0xff] }
  0x48   : > { %1695 = vmatprep.subr.mxu0 %v284_v52  ;;  %725 = vmatprep.mubr.f32.mxu1 %v368_v54  ;;  %v371_v52 = vld [vmem:[%s2183_s27 + $0x1b8] sm:$0xff]  ;;  %v378_v54 = vld [vmem:[%s2183_s27 + $0x1f0] sm:$0xff] }
  0x49   : > { %581 = vmatmul.mubr.f32.gmra.mxu0 %v365_v53  ;;  %1812 = vmatpush3.msra.mxu1 %v296_v50  ;;  %v364_v50 = vld [vmem:[%s2183_s27 + $0x180] sm:$0xff] }
  0x4a   : > { %585 = vmatprep.mubr.f32.mxu0 %v373_v55  ;;  %1696 = vmatpush3.msra.mxu0 %v268_v56  ;;  %v348_v53 = vld [vmem:[%s2183_s27 + $0x100] sm:$0xff]  ;;  %v385_v56 = vld [vmem:[%s2183_s27 + $0x228] sm:$0xff] }
  0x4b   : > { %1697 = vmatprep.subr.mxu0 %v283_v57  ;;  %726 = vmatmul.mubr.f32.gmra.mxu1 %v367_v58  ;;  %v356_v55 = vld [vmem:[%s2183_s27 + $0x140] sm:$0xff]  ;;  %v355_v57 = vld [vmem:[%s2183_s27 + $0x138] sm:$0xff] }
  0x4c   : > { %1698 = vmatpush3.msra.mxu0 %v267_v59  ;;  %730 = vmatprep.mubr.f32.mxu1 %v375_v61  ;;  %v392_v58 = vld [vmem:[%s2183_s27 + $0x260] sm:$0xff]  ;;  %v363_v59 = vld [vmem:[%s2183_s27 + $0x178] sm:$0xff]  ;;  %v362_v61 = vld [vmem:[%s2183_s27 + $0x170] sm:$0xff] }
  0x4d   : > { %586 = vmatmul.mubr.f32.gmra.mxu0 %v372_v60  ;;  %1699 = vmatprep.subr.mxu0 %v282_v63  ;;  %v399_v60 = vld [vmem:[%s2183_s27 + $0x298] sm:$0xff]  ;;  %v370_v63 = vld [vmem:[%s2183_s27 + $0x1b0] sm:$0xff] }
  0x4e   : > { %590 = vmatprep.mubr.f32.mxu0 %v380_v62  ;;  %1700 = vmatpush3.msra.mxu0 %v266_v0  ;;  %v406_v62 = vld [vmem:[%s2183_s27 + $0x2d0] sm:$0xff]  ;;  %v413_v0 = vld [vmem:[%s2183_s27 + $0x308] sm:$0xff] }
  0x4f   : > { %1813 = vmatprep.subr.mxu1 %v295_v1  ;;  %731 = vmatmul.mubr.f32.gmra.mxu1 %v374_v2  ;;  %v420_v2 = vld [vmem:[%s2183_s27 + $0x340] sm:$0xff] }
  0x50   : > { %1701 = vmatprep.subr.mxu0 %v281_v3  ;;  %735 = vmatprep.mubr.f32.mxu1 %v382_v5  ;;  %v377_v3 = vld [vmem:[%s2183_s27 + $0x1e8] sm:$0xff]  ;;  %v376_v5 = vld [vmem:[%s2183_s27 + $0x1e0] sm:$0xff] }
  0x51   : > { %591 = vmatmul.mubr.f32.gmra.mxu0 %v379_v4  ;;  %1814 = vmatpush3.msra.mxu1 %v295_v1  ;;  %v369_v1 = vld [vmem:[%s2183_s27 + $0x1a8] sm:$0xff]  ;;  %v427_v4 = vld [vmem:[%s2183_s27 + $0x378] sm:$0xff] }
  0x52   : > { %595 = vmatprep.mubr.f32.mxu0 %v387_v6  ;;  %1702 = vmatpush3.msra.mxu0 %v265_v7  ;;  %v384_v6 = vld [vmem:[%s2183_s27 + $0x220] sm:$0xff]  ;;  %v383_v7 = vld [vmem:[%s2183_s27 + $0x218] sm:$0xff] }
  0x53   : > { %1703 = vmatprep.subr.mxu0 %v280_v8  ;;  %736 = vmatmul.mubr.f32.gmra.mxu1 %v381_v9  ;;  %v391_v8 = vld [vmem:[%s2183_s27 + $0x258] sm:$0xff]  ;;  %v390_v9 = vld [vmem:[%s2183_s27 + $0x250] sm:$0xff] }
  0x54   : > { %1704 = vmatpush3.msra.mxu0 %v264_v10  ;;  %740 = vmatprep.mubr.f32.mxu1 %v389_v12  ;;  %v398_v10 = vld [vmem:[%s2183_s27 + $0x290] sm:$0xff]  ;;  %v405_v12 = vld [vmem:[%s2183_s27 + $0x2c8] sm:$0xff] }
  0x55   : > { %596 = vmatmul.mubr.f32.gmra.mxu0 %v386_v11  ;;  %1705 = vmatprep.subr.mxu0 %v279_v14  ;;  %v397_v11 = vld [vmem:[%s2183_s27 + $0x288] sm:$0xff]  ;;  %v412_v14 = vld [vmem:[%s2183_s27 + $0x300] sm:$0xff] }
  0x56   : > { %600 = vmatprep.mubr.f32.mxu0 %v394_v13  ;;  %1706 = vmatpush3.msra.mxu0 %v263_v15  ;;  %v404_v13 = vld [vmem:[%s2183_s27 + $0x2c0] sm:$0xff]  ;;  %v314_v15 = vld [vmem:[%s2863_s1 + $0x398] sm:$0xff] }
  0x57   : > { %741 = vmatmul.mubr.f32.gmra.mxu1 %v388_v16  ;;  %1839 = vmatprep.subr.mxu1 %v314_v15  ;;  %v411_v16 = vld [vmem:[%s2183_s27 + $0x2f8] sm:$0xff] }
  0x58   : > { %745 = vmatprep.mubr.f32.mxu1 %v396_v18  ;;  %v419_v18 = vld [vmem:[%s2183_s27 + $0x338] sm:$0xff] }
  0x59   : > { %601 = vmatmul.mubr.f32.gmra.mxu0 %v393_v17  ;;  %v313_v17 = vld [vmem:[%s2863_s1 + $0x390] sm:$0xff] }
  0x5a   : > { %605 = vmatprep.mubr.f32.mxu0 %v401_v19  ;;  %v312_v19 = vld [vmem:[%s2863_s1 + $0x388] sm:$0xff] }
  0x5b   : > { %746 = vmatmul.mubr.f32.gmra.mxu1 %v395_v20  ;;  %v418_v20 = vld [vmem:[%s2183_s27 + $0x330] sm:$0xff] }
  0x5c   : > { %750 = vmatprep.mubr.f32.mxu1 %v403_v22  ;;  %v426_v22 = vld [vmem:[%s2183_s27 + $0x370] sm:$0xff] }
  0x5d   : > { %606 = vmatmul.mubr.f32.gmra.mxu0 %v400_v21  ;;  %v311_v21 = vld [vmem:[%s2863_s1 + $0x380] sm:$0xff] }
  0x5e   : > { %610 = vmatprep.mubr.f32.mxu0 %v408_v23  ;;  %v310_v23 = vld [vmem:[%s2863_s1 + $0x378] sm:$0xff] }
  0x5f   : > { %751 = vmatmul.mubr.f32.gmra.mxu1 %v402_v24  ;;  %v425_v24 = vld [vmem:[%s2183_s27 + $0x368] sm:$0xff] }
  0x60   : > { %755 = vmatprep.mubr.f32.mxu1 %v410_v26  ;;  %v308_v26 = vld [vmem:[%s2863_s1 + $0x368] sm:$0xff] }
  0x61   : > { %611 = vmatmul.mubr.f32.gmra.mxu0 %v407_v25  ;;  %v309_v25 = vld [vmem:[%s2863_s1 + $0x370] sm:$0xff] }
  0x62   : > { %615 = vmatprep.mubr.f32.mxu0 %v415_v27  ;;  %v307_v27 = vld [vmem:[%s2863_s1 + $0x360] sm:$0xff] }
  0x63   : > { %756 = vmatmul.mubr.f32.gmra.mxu1 %v409_v28  ;;  %v306_v28 = vld [vmem:[%s2863_s1 + $0x358] sm:$0xff] }
  0x64   : > { %760 = vmatprep.mubr.f32.mxu1 %v417_v30  ;;  %v304_v30 = vld [vmem:[%s2863_s1 + $0x348] sm:$0xff] }
  0x65   : > { %616 = vmatmul.mubr.f32.gmra.mxu0 %v414_v29  ;;  %v305_v29 = vld [vmem:[%s2863_s1 + $0x350] sm:$0xff] }
  0x66   : > { %620 = vmatprep.mubr.f32.mxu0 %v422_v31  ;;  %v303_v31 = vld [vmem:[%s2863_s1 + $0x340] sm:$0xff] }
  0x67   : > { %761 = vmatmul.mubr.f32.gmra.mxu1 %v416_v32  ;;  %v302_v32 = vld [vmem:[%s2863_s1 + $0x338] sm:$0xff] }
  0x68   : > { %765 = vmatprep.mubr.f32.mxu1 %v424_v34  ;;  %v300_v34 = vld [vmem:[%s2863_s1 + $0x328] sm:$0xff] }
  0x69   : > { %621 = vmatmul.mubr.f32.gmra.mxu0 %v421_v33  ;;  %v301_v33 = vld [vmem:[%s2863_s1 + $0x330] sm:$0xff] }
  0x6a   : > { %835 = vmatprep.mubr.f32.mxu0 %v321_v35  ;;  %v299_v35 = vld [vmem:[%s2863_s1 + $0x320] sm:$0xff] }
  0x6b   : > { %766 = vmatmul.mubr.f32.gmra.mxu1 %v423_v36 }
  0x6c   : > { %1815 = vmatprep.mubr.msk.f32.mxu1 %vm432_vm0, %v322_v38 }
  0x6d   : > { %836 = vmatmul.mubr.f32.vlgmr.msra.gmra.mxu0 %v320_v37 }
  0x6e   : > { %840 = vmatprep.mubr.f32.mxu0 %v328_v39 }
  0x6f   : > { %1816 = vmatmul.mubr.msk.f32.vlgmr.msra.gmra.mxu1 %vm432_vm0, %v329_v40 }
  0x70   : > { %1818 = vmatprep.mubr.msk.f32.mxu1 %vm432_vm0, %v336_v42  ;;  %1840 = vmatpush3.msra.mxu1 %v314_v15 }
  0x71   : > { %841 = vmatmul.mubr.f32.gmra.mxu0 %v327_v41  ;;  %1841 = vmatprep.subr.mxu1 %v313_v17 }
  0x72   : > { %845 = vmatprep.mubr.f32.mxu0 %v335_v43  ;;  %1842 = vmatpush3.msra.mxu1 %v313_v17 }
  0x73   : > { %1819 = vmatmul.mubr.msk.f32.gmra.mxu1 %vm432_vm0, %v343_v44  ;;  %1843 = vmatprep.subr.mxu1 %v312_v19 }
  0x74   : > { %1821 = vmatprep.mubr.msk.f32.mxu1 %vm432_vm0, %v350_v46  ;;  %1844 = vmatpush3.msra.mxu1 %v312_v19 }
  0x75   : > { %846 = vmatmul.mubr.f32.gmra.mxu0 %v334_v45  ;;  %1845 = vmatprep.subr.mxu1 %v311_v21 }
  0x76   : > { %850 = vmatprep.mubr.f32.mxu0 %v342_v47  ;;  %1846 = vmatpush3.msra.mxu1 %v311_v21 }
  0x77   : > { %1822 = vmatmul.mubr.msk.f32.gmra.mxu1 %vm432_vm0, %v357_v48  ;;  %1847 = vmatprep.subr.mxu1 %v310_v23 }
  0x78   : > { %1824 = vmatprep.mubr.msk.f32.mxu1 %vm432_vm0, %v364_v50  ;;  %1848 = vmatpush3.msra.mxu1 %v310_v23 }
  0x79   : > { %851 = vmatmul.mubr.f32.gmra.mxu0 %v341_v49  ;;  %1849 = vmatprep.subr.mxu1 %v309_v25 }
  0x7a   : > { %855 = vmatprep.mubr.f32.mxu0 %v349_v51  ;;  %1850 = vmatpush3.msra.mxu1 %v309_v25 }
  0x7b   : > { %1825 = vmatmul.mubr.msk.f32.gmra.mxu1 %vm432_vm0, %v371_v52  ;;  %1851 = vmatprep.subr.mxu1 %v308_v26 }
  0x7c   : > { %1827 = vmatprep.mubr.msk.f32.mxu1 %vm432_vm0, %v378_v54  ;;  %1852 = vmatpush3.msra.mxu1 %v308_v26 }
  0x7d   : > { %856 = vmatmul.mubr.f32.gmra.mxu0 %v348_v53  ;;  %1853 = vmatprep.subr.mxu1 %v307_v27 }
  0x7e   : > { %860 = vmatprep.mubr.f32.mxu0 %v356_v55  ;;  %1854 = vmatpush3.msra.mxu1 %v307_v27 }
  0x7f   : > { %1828 = vmatmul.mubr.msk.f32.gmra.mxu1 %vm432_vm0, %v385_v56  ;;  %1855 = vmatprep.subr.mxu1 %v306_v28 }
  0x80   : > { %1830 = vmatprep.mubr.msk.f32.mxu1 %vm432_vm0, %v392_v58  ;;  %1856 = vmatpush3.msra.mxu1 %v306_v28 }
  0x81   : > { %861 = vmatmul.mubr.f32.gmra.mxu0 %v355_v57  ;;  %1857 = vmatprep.subr.mxu1 %v305_v29 }
  0x82   : > { %865 = vmatprep.mubr.f32.mxu0 %v363_v59  ;;  %1858 = vmatpush3.msra.mxu1 %v305_v29 }
  0x83   : > { %1831 = vmatmul.mubr.msk.f32.gmra.mxu1 %vm432_vm0, %v399_v60  ;;  %1859 = vmatprep.subr.mxu1 %v304_v30 }
  0x84   : > { %1833 = vmatprep.mubr.msk.f32.mxu1 %vm432_vm0, %v406_v62  ;;  %1860 = vmatpush3.msra.mxu1 %v304_v30  ;;  %v2610_v30 = vld [vmem:[%s2863_s1 + $0x3a0] sm:$0xff] }
  0x85   : > { %866 = vmatmul.mubr.f32.gmra.mxu0 %v362_v61  ;;  %1861 = vmatprep.subr.mxu1 %v303_v31  ;;  %2873 = vst [vmem:[#allocation7_spill] sm:$0xff] %v2610_v30 }
  0x86   : > { %870 = vmatprep.mubr.f32.mxu0 %v370_v63  ;;  %1862 = vmatpush3.msra.mxu1 %v303_v31 }
  0x87   : > { %1834 = vmatmul.mubr.msk.f32.gmra.mxu1 %vm432_vm0, %v413_v0  ;;  %1863 = vmatprep.subr.mxu1 %v302_v32 }
  0x88   : > { %1836 = vmatprep.mubr.msk.f32.mxu1 %vm432_vm0, %v420_v2  ;;  %1864 = vmatpush3.msra.mxu1 %v302_v32 }
  0x89   : > { %871 = vmatmul.mubr.f32.gmra.mxu0 %v369_v1  ;;  %1865 = vmatprep.subr.mxu1 %v301_v33 }
  0x8a   : > { %875 = vmatprep.mubr.f32.mxu0 %v377_v3  ;;  %1866 = vmatpush3.msra.mxu1 %v301_v33 }
  0x8b   : > { %1837 = vmatmul.mubr.msk.f32.gmra.mxu1 %vm432_vm0, %v427_v4  ;;  %1867 = vmatprep.subr.mxu1 %v300_v34 }
  0x8c   : > { %1868 = vmatpush3.msra.mxu1 %v300_v34 }
  0x8d   : > { %876 = vmatmul.mubr.f32.gmra.mxu0 %v376_v5  ;;  %1869 = vmatprep.subr.mxu1 %v299_v35 }
  0x8e   : > { %880 = vmatprep.mubr.f32.mxu0 %v384_v6  ;;  %1870 = vmatpush3.msra.mxu1 %v299_v35 }
  0x91   : > { %881 = vmatmul.mubr.f32.gmra.mxu0 %v383_v7 }
  0x92   : > { %885 = vmatprep.mubr.f32.mxu0 %v391_v8 }
  0x95   : > { %886 = vmatmul.mubr.f32.gmra.mxu0 %v390_v9 }
  0x96   : > { %890 = vmatprep.mubr.f32.mxu0 %v398_v10 }
  0x99   : > { %891 = vmatmul.mubr.f32.gmra.mxu0 %v397_v11 }
  0x9a   : > { %895 = vmatprep.mubr.f32.mxu0 %v405_v12 }
  0x9d   : > { %896 = vmatmul.mubr.f32.gmra.mxu0 %v404_v13 }
  0x9e   : > { %900 = vmatprep.mubr.f32.mxu0 %v412_v14 }
  0xa1   : > { %901 = vmatmul.mubr.f32.gmra.mxu0 %v411_v16 }
  0xa2   : > { %905 = vmatprep.mubr.f32.mxu0 %v419_v18  ;;  %v428_v18 = vlaneseq }
  0xa4   : > { %v2594_v23 = vshrl.u32 %v428_v18, 7 }
  0xa5   : > { %906 = vmatmul.mubr.f32.gmra.mxu0 %v418_v20 }
  0xa6   : > { %910 = vmatprep.mubr.f32.mxu0 %v426_v22  ;;  %2868 = vst [vmem:[#allocation2_spill] sm:$0xff] %v2594_v23  ;;  %v430_v28 = vsub.s32 0, %v2594_v23 }
  0xa8   : > { %v2619_v34 = vrot.slane %v2610_v30, %v430_v28 }
  0xa9   : > { %911 = vmatmul.mubr.f32.gmra.mxu0 %v425_v24 }
  0xec   : > { %v2496_v36 = vpop.f32.mrf.mxu0 }
  0xee   : > { %v1548_v37 = vpop.f32.mrf.mxu0 }
  0xef   : > { %v2498_v38 = vpop.f32.mrf.mxu1  ;;  %v1549_v35 = vadd.f32 %v1548_v37, %v2496_v36 }
  0xf1   : > { %v2500_v39 = vpop.f32.mrf.mxu0  ;;  %v2502_v40 = vpop.f32.mrf.mxu1 }
  0xf3   : > { %v2504_v41 = vpop.f32.mrf.mxu0  ;;  %v2506_v42 = vpop.f32.mrf.mxu1 }
  0xf5   : > { %v2508_v43 = vpop.f32.mrf.mxu0  ;;  %v2510_v44 = vpop.f32.mrf.mxu1 }
  0xf7   : > { %v2512_v45 = vpop.f32.mrf.mxu0  ;;  %v2514_v46 = vpop.f32.mrf.mxu1 }
  0xf8   : > { %v1555_v37 = vadd.f32 %v2512_v45, %v2508_v43 }
  0xf9   : > { %v2516_v47 = vpop.f32.mrf.mxu0  ;;  %v2518_v48 = vpop.f32.mrf.mxu1 }
  0xfb   : > { %v2520_v49 = vpop.f32.mrf.mxu0  ;;  %v2522_v50 = vpop.f32.mrf.mxu1 }
  0xfc   : > { %v1558_v43 = vadd.f32 %v2520_v49, %v2516_v47 }
  0xfd   : > { %v2524_v51 = vpop.f32.mrf.mxu0  ;;  %v2526_v52 = vpop.f32.mrf.mxu1 }
  0xff   : > { %v2528_v53 = vpop.f32.mrf.mxu0  ;;  %v2530_v54 = vpop.f32.mrf.mxu1 }
 0x101   : > { %v2532_v55 = vpop.f32.mrf.mxu0  ;;  %v2534_v56 = vpop.f32.mrf.mxu1 }
 0x103   : > { %v2536_v57 = vpop.f32.mrf.mxu0  ;;  %v2538_v58 = vpop.f32.mrf.mxu1 }
 0x105   : > { %v2540_v59 = vpop.f32.mrf.mxu0  ;;  %v2542_v60 = vpop.f32.mrf.mxu1 }
 0x107   : > { %v2544_v61 = vpop.f32.mrf.mxu0  ;;  %v2546_v62 = vpop.f32.mrf.mxu1 }
 0x109   : > { %v2548_v63 = vpop.f32.mrf.mxu0  ;;  %v2550_v0 = vpop.f32.mrf.mxu1 }
 0x10b   : > { %v2552_v1 = vpop.f32.mrf.mxu0  ;;  %v2554_v2 = vpop.f32.mrf.mxu1 }
 0x10d   : > { %v2556_v3 = vpop.f32.mrf.mxu0  ;;  %v2558_v4 = vpop.f32.mrf.mxu1 }
 0x10f   : > { %v2560_v5 = vpop.f32.mrf.mxu0  ;;  %v2562_v6 = vpop.f32.mrf.mxu1 }
 0x111   : > { %v2564_v7 = vpop.f32.mrf.mxu0  ;;  %v2566_v8 = vpop.f32.mrf.mxu1 }
 0x113   : > { %v2568_v9 = vpop.f32.mrf.mxu0  ;;  %v2570_v10 = vpop.f32.mrf.mxu1 }
 0x115   : > { %v2572_v11 = vpop.f32.mrf.mxu0  ;;  %v2574_v12 = vpop.f32.mrf.mxu1 }
 0x117   : > { %v2576_v13 = vpop.f32.mrf.mxu0  ;;  %v2578_v14 = vpop.f32.mrf.mxu1 }
 0x119   : > { %v2580_v15 = vpop.f32.mrf.mxu0  ;;  %v2582_v16 = vpop.f32.mrf.mxu1 }
 0x11b   : > { %v2584_v17 = vpop.f32.mrf.mxu0  ;;  %v2586_v19 = vpop.f32.mrf.mxu1 }
 0x11d   : > { %v2588_v20 = vpop.f32.mrf.mxu0  ;;  %v2590_v21 = vpop.f32.mrf.mxu1 }
 0x11f   : > { %v2592_v22 = vpop.f32.mrf.mxu0  ;;  %v2596_v24 = vpop.f32.mrf.mxu1 }
 0x121   : > { %v2598_v25 = vpop.f32.mrf.mxu0  ;;  %v2600_v26 = vpop.f32.mrf.mxu1 }
 0x122   : > { %2869 = vst [vmem:[#allocation3_spill] sm:$0xff] %v2598_v25  ;;  %2870 = vst [vmem:[#allocation4_spill] sm:$0xff] %v2600_v26  ;;  %v548_v25 = vadd.f32 %v1549_v35, %v2619_v34  ;;  %v1632_v35 = vadd.f32 %v2510_v44, %v2506_v42 }
 0x123   : > { %v2602_v27 = vpop.f32.mrf.mxu0  ;;  %v2605_v29 = vpop.f32.mrf.mxu1 }
 0x124   : > { %2871 = vst [vmem:[#allocation5_spill] sm:$0xff] %v2602_v27  ;;  %2872 = vst [vmem:[#allocation6_spill] sm:$0xff] %v2605_v29 }
 0x125   : > { %v2612_v31 = vpop.f32.mrf.mxu0  ;;  %v2614_v32 = vpop.f32.mrf.mxu1 }
 0x126   : > { %2874 = vst [vmem:[#allocation8_spill] sm:$0xff] %v2612_v31  ;;  %2875 = vst [vmem:[#allocation9_spill] sm:$0xff] %v2614_v32  ;;  %v1629_v32 = vadd.f32 %v2502_v40, %v2498_v38 }
 0x127   : > { %v2616_v33 = vpop.f32.mrf.mxu0  ;;  %v2622_v18 = vpop.f32.mrf.mxu1 }
 0x128   : > { %2876 = vst [vmem:[#allocation10_spill] sm:$0xff] %v2616_v33  ;;  %2877 = vst [vmem:[#allocation11_spill] sm:$0xff] %v2622_v18  ;;  %v1552_v33 = vadd.f32 %v2504_v41, %v2500_v39  ;;  %v558_v41 = vadd.f32 %v1555_v37, %v2619_v34 }
 0x129   : > { %v2624_v23 = vpop.f32.mrf.mxu0  ;;  %v2626_v29 = vpop.f32.mrf.mxu1 }
 0x12a   : > { %2878 = vst [vmem:[#allocation12_spill] sm:$0xff] %v2624_v23  ;;  %2879 = vst [vmem:[#allocation13_spill] sm:$0xff] %v2626_v29  ;;  %v693_v29 = vadd.f32 %v1629_v32, %v548_v25 }
 0x12b   : > { %v2628_v27 = vpop.f32.mrf.mxu0  ;;  %v2635_v28 = vpop.f32.mrf.mxu1 }
 0x12c   : > { %2880 = vst [vmem:[#allocation14_spill] sm:$0xff] %v2628_v27  ;;  %2881 = vst [vmem:[#allocation15_spill] sm:$0xff] %v2635_v28  ;;  %v553_v27 = vadd.f32 %v1552_v33, %v2619_v34 }
 0x12d   : > { %v1707_v30 = vpop.f32.mrf.mxu0  ;;  %v2637_v36 = vpop.f32.mrf.mxu1 }
 0x12e   : > { %2882 = vst [vmem:[#allocation16_spill] sm:$0xff] %v2637_v36  ;;  %v1635_v36 = vadd.f32 %v2518_v48, %v2514_v46  ;;  %v698_v26 = vadd.f32 %v1632_v35, %v553_v27  ;;  %v1638_v46 = vadd.f32 %v2526_v52, %v2522_v50 }
 0x12f   : > { %v1708_v23 = vpop.f32.mrf.mxu0  ;;  %v1817_v38 = vpop.f32.mrf.mxu1 }
 0x130   : > { %v1709_v18 = vadd.f32 %v1708_v23, %v1707_v30  ;;  %v703_v23 = vadd.f32 %v1635_v36, %v558_v41  ;;  %v1641_v36 = vadd.f32 %v2534_v56, %v2530_v54  ;;  %v1644_v54 = vadd.f32 %v2542_v60, %v2538_v58 }
 0x131   : > { %v1710_v40 = vpop.f32.mrf.mxu0  ;;  %v982_v39 = vpop.f32.mrf.mxu1 }
 0x132   : > { %v838_v31 = vadd.f32 %v1709_v18, %v693_v29  ;;  %v1561_v29 = vadd.f32 %v2528_v53, %v2524_v51  ;;  %v563_v18 = vadd.f32 %v1558_v43, %v2619_v34  ;;  %v1564_v53 = vadd.f32 %v2536_v57, %v2532_v55 }
 0x133   : > { %v1711_v28 = vpop.f32.mrf.mxu0  ;;  %v1820_v33 = vpop.f32.mrf.mxu1  ;;  %v1567_v43 = vadd.f32 %v2544_v61, %v2540_v59  ;;  %v1570_v61 = vadd.f32 %v2552_v1, %v2548_v63 }
 0x134   : > { %v1712_v45 = vadd.f32 %v1711_v28, %v1710_v40  ;;  %v983_v25 = vadd.f32 %v982_v39, %v838_v31  ;;  %v708_v51 = vadd.f32 %v1638_v46, %v563_v18 }
 0x135   : > { %v1713_v32 = vpop.f32.mrf.mxu0  ;;  %v992_v49 = vpop.f32.mrf.mxu1 }
 0x136   : > { %v843_v42 = vadd.f32 %v1712_v45, %v698_v26  ;;  %v1061_v44 = vmax.f32 %v983_v25, 0.0  ;;  %v568_v26 = vadd.f32 %v1561_v29, %v2619_v34  ;;  %v573_v25 = vadd.f32 %v1564_v53, %v2619_v34 }
 0x137   : > { %v1714_v30 = vpop.f32.mrf.mxu0  ;;  %v1823_v52 = vpop.f32.mrf.mxu1  ;;  %v1647_v29 = vadd.f32 %v2550_v0, %v2546_v62  ;;  %v1650_v62 = vadd.f32 %v2558_v4, %v2554_v2 }
 0x138   : > { %v988_v48 = vadd.f32 %v1817_v38, %v843_v42  ;;  %v1715_v27 = vadd.f32 %v1714_v30, %v1713_v32  ;;  %1871 = vmatprep.mubr.f32.mxu1 %v1061_v44  ;;  %v713_v41 = vadd.f32 %v1641_v36, %v568_v26  ;;  %v718_v59 = vadd.f32 %v1644_v54, %v573_v25 }
 0x139   : > { %v1716_v47 = vpop.f32.mrf.mxu0  ;;  %v1002_v32 = vpop.f32.mrf.mxu1 }
 0x13a   : > { %v1062_v31 = vmax.f32 %v988_v48, 0.0  ;;  %v848_v28 = vadd.f32 %v1715_v27, %v703_v23  ;;  %v578_v23 = vadd.f32 %v1567_v43, %v2619_v34 }
 0x13b   : > { %v1717_v37 = vpop.f32.mrf.mxu0  ;;  %v1826_v60 = vpop.f32.mrf.mxu1 }
 0x13c   : > { %v1718_v35 = vadd.f32 %v1717_v37, %v1716_v47  ;;  %v993_v40 = vadd.f32 %v992_v49, %v848_v28  ;;  %1872 = vmatmul.mubr.f32.vlgmr.msra.gmra.mxu1 %v1062_v31  ;;  %v723_v27 = vadd.f32 %v1647_v29, %v578_v23  ;;  %v1573_v47 = vadd.f32 %v2560_v5, %v2556_v3 }
 0x13d   : > { %v1719_v50 = vpop.f32.mrf.mxu0  ;;  %v583_v31 = vadd.f32 %v1570_v61, %v2619_v34  ;;  %v1012_v28 = vpop.f32.mrf.mxu1  ;;  %v1576_v5 = vadd.f32 %v2568_v9, %v2564_v7 }
 0x13e   : > { %v853_v38 = vadd.f32 %v1718_v35, %v708_v51  ;;  %v1063_v39 = vmax.f32 %v993_v40, 0.0  ;;  %v588_v37 = vadd.f32 %v1573_v47, %v2619_v34  ;;  %v1653_v51 = vadd.f32 %v2566_v8, %v2562_v6  ;;  %v2885_v47 = vld [vmem:[#allocation5_spill] sm:$0xff] }
 0x13f   : > { %v1720_v45 = vpop.f32.mrf.mxu0  ;;  %v728_v3 = vadd.f32 %v1650_v62, %v583_v31  ;;  %v1829_v4 = vpop.f32.mrf.mxu1  ;;  %v593_v43 = vadd.f32 %v1576_v5, %v2619_v34  ;;  %v1656_v6 = vadd.f32 %v2574_v12, %v2570_v10 }
 0x140   : > { %v1721_v56 = vadd.f32 %v1720_v45, %v1719_v50  ;;  %1874 = vmatprep.mubr.f32.mxu1 %v1063_v39  ;;  %v998_v55 = vadd.f32 %v1820_v33, %v853_v38  ;;  %v733_v38 = vadd.f32 %v1653_v51, %v588_v37  ;;  %v1579_v39 = vadd.f32 %v2576_v13, %v2572_v11 }
 0x141   : > { %v1722_v57 = vpop.f32.mrf.mxu0  ;;  %v1022_v45 = vpop.f32.mrf.mxu1  ;;  %v738_v11 = vadd.f32 %v1656_v6, %v593_v43  ;;  %v1582_v13 = vadd.f32 %v2584_v17, %v2580_v15 }
 0x142   : > { %v858_v42 = vadd.f32 %v1721_v56, %v713_v41  ;;  %v1064_v44 = vmax.f32 %v998_v55, 0.0  ;;  %v598_v56 = vadd.f32 %v1579_v39, %v2619_v34  ;;  %v1659_v55 = vadd.f32 %v2582_v16, %v2578_v14  ;;  %v2891_v39 = vld [vmem:[#allocation13_spill] sm:$0xff] }
 0x143   : > { %v1723_v30 = vpop.f32.mrf.mxu0  ;;  %v1832_v12 = vpop.f32.mrf.mxu1  ;;  %v603_v61 = vadd.f32 %v1582_v13, %v2619_v34  ;;  %v1662_v14 = vadd.f32 %v2590_v21, %v2586_v19 }
 0x144   : > { %v1724_v18 = vadd.f32 %v1723_v30, %v1722_v57  ;;  %v1003_v46 = vadd.f32 %v1002_v32, %v858_v42  ;;  %1875 = vmatmul.mubr.f32.gmra.mxu1 %v1064_v44  ;;  %v743_v29 = vadd.f32 %v1659_v55, %v598_v56  ;;  %v1585_v30 = vadd.f32 %v2592_v22, %v2588_v20  ;;  %v2884_v22 = vld [vmem:[#allocation3_spill] sm:$0xff] }
 0x145   : > { %v1725_v58 = vpop.f32.mrf.mxu0  ;;  %v748_v20 = vadd.f32 %v1662_v14, %v603_v61 }
 0x146   : > { %v863_v33 = vadd.f32 %v1724_v18, %v718_v59  ;;  %v1065_v48 = vmax.f32 %v1003_v46, 0.0  ;;  %v1032_v18 = vpop.f32.mrf.mxu1 }
 0x147   : > { %v1726_v49 = vpop.f32.mrf.mxu0 }
 0x148   : > { %v1727_v0 = vadd.f32 %v1726_v49, %v1725_v58  ;;  %1877 = vmatprep.mubr.f32.mxu1 %v1065_v48  ;;  %v1008_v63 = vadd.f32 %v1823_v52, %v863_v33  ;;  %v2883_v33 = vld [vmem:[#allocation4_spill] sm:$0xff]  ;;  %v1588_v49 = vadd.f32 %v2885_v47, %v2884_v22  ;;  %v1835_v21 = vpop.f32.mrf.mxu1 }
 0x149   : > { %v1728_v1 = vpop.f32.mrf.mxu0  ;;  %v1665_v48 = vadd.f32 %v2883_v33, %v2596_v24  ;;  %v2888_v24 = vld [vmem:[#allocation6_spill] sm:$0xff] }
 0x14a   : > { %v868_v26 = vadd.f32 %v1727_v0, %v723_v27  ;;  %v1066_v36 = vmax.f32 %v1008_v63, 0.0  ;;  %v613_v51 = vadd.f32 %v1588_v49, %v2619_v34 }
 0x14b   : > { %v1729_v53 = vpop.f32.mrf.mxu0 }
 0x14c   : > { %v1730_v35 = vadd.f32 %v1729_v53, %v1728_v1  ;;  %v1013_v40 = vadd.f32 %v1012_v28, %v868_v26  ;;  %1878 = vmatmul.mubr.f32.gmra.mxu1 %v1066_v36  ;;  %v2886_v28 = vld [vmem:[#allocation8_spill] sm:$0xff]  ;;  %v2887_v26 = vld [vmem:[#allocation10_spill] sm:$0xff]  ;;  %v2889_v53 = vld [vmem:[#allocation9_spill] sm:$0xff] }
 0x14d   : > { %v1731_v2 = vpop.f32.mrf.mxu0  ;;  %v1591_v36 = vadd.f32 %v2887_v26, %v2886_v28 }
 0x14e   : > { %v873_v50 = vadd.f32 %v1730_v35, %v728_v3  ;;  %v1067_v52 = vmax.f32 %v1013_v40, 0.0  ;;  %v1668_v3 = vadd.f32 %v2889_v53, %v2888_v24 }
 0x14f   : > { %v1732_v41 = vpop.f32.mrf.mxu0 }
 0x150   : > { %v1733_v8 = vadd.f32 %v1732_v41, %v1731_v2  ;;  %1880 = vmatprep.mubr.f32.mxu1 %v1067_v52  ;;  %v1018_v7 = vadd.f32 %v1826_v60, %v873_v50  ;;  %v608_v60 = vadd.f32 %v1585_v30, %v2619_v34  ;;  %v1042_v2 = vpop.f32.mrf.mxu1  ;;  %v618_v52 = vadd.f32 %v1591_v36, %v2619_v34 }
 0x151   : > { %v1734_v9 = vpop.f32.mrf.mxu0  ;;  %v758_v6 = vadd.f32 %v1668_v3, %v613_v51 }
 0x152   : > { %v878_v25 = vadd.f32 %v1733_v8, %v733_v38  ;;  %v1068_v54 = vmax.f32 %v1018_v7, 0.0  ;;  %v753_v1 = vadd.f32 %v1665_v48, %v608_v60  ;;  %v2890_v38 = vld [vmem:[#allocation11_spill] sm:$0xff]  ;;  %v2892_v8 = vld [vmem:[#allocation12_spill] sm:$0xff]  ;;  %v2893_v7 = vld [vmem:[#allocation14_spill] sm:$0xff]  ;;  %v1838_v56 = vpop.f32.mrf.mxu1 }
 0x153   : > { %v1735_v57 = vpop.f32.mrf.mxu0  ;;  %v1671_v41 = vadd.f32 %v2891_v39, %v2890_v38  ;;  %v2896_v60 = vld [vmem:[#allocation2_spill] sm:$0xff]  ;;  %v2897_v48 = vld [vmem:[#allocation7_spill] sm:$0xff] }
 0x154   : > { %v1736_v32 = vadd.f32 %v1735_v57, %v1734_v9  ;;  %v1023_v42 = vadd.f32 %v1022_v45, %v878_v25  ;;  %1881 = vmatmul.mubr.f32.gmra.mxu1 %v1068_v54  ;;  %v1594_v9 = vadd.f32 %v2893_v7, %v2892_v8  ;;  %v1052_v30 = vpop.f32.mrf.mxu1  ;;  %v1079_v33 = vsub.s32 1, %v2896_v60 }
 0x155   : > { %v1737_v10 = vpop.f32.mrf.mxu0 }
 0x156   : > { %v883_v44 = vadd.f32 %v1736_v32, %v738_v11  ;;  %v1069_v23 = vmax.f32 %v1023_v42, 0.0  ;;  %v763_v11 = vadd.f32 %v1671_v41, %v618_v52  ;;  %v623_v32 = vadd.f32 %v1594_v9, %v2619_v34  ;;  %v2894_v42 = vld [vmem:[#allocation15_spill] sm:$0xff] }
 0x157   : > { %v1738_v59 = vpop.f32.mrf.mxu0 }
 0x158   : > { %v1739_v16 = vadd.f32 %v1738_v59, %v1737_v10  ;;  %1883 = vmatprep.mubr.f32.mxu1 %v1069_v23  ;;  %v1028_v15 = vadd.f32 %v1829_v4, %v883_v44  ;;  %v2895_v10 = vld [vmem:[#allocation16_spill] sm:$0xff] }
 0x159   : > { %v1740_v17 = vpop.f32.mrf.mxu0 }
 0x15a   : > { %v888_v46 = vadd.f32 %v1739_v16, %v743_v29  ;;  %v1070_v58 = vmax.f32 %v1028_v15, 0.0 }
 0x15b   : > { %v1741_v27 = vpop.f32.mrf.mxu0 }
 0x15c   : > { %v1742_v31 = vadd.f32 %v1741_v27, %v1740_v17  ;;  %v1033_v62 = vadd.f32 %v1032_v18, %v888_v46  ;;  %1884 = vmatmul.mubr.f32.gmra.mxu1 %v1070_v58  ;;  %v2714_v27 = vrot.slane %v2897_v48, %v1079_v33 }
 0x15d   : > { %v1743_v19 = vpop.f32.mrf.mxu0 }
 0x15e   : > { %v893_v0 = vadd.f32 %v1742_v31, %v748_v20  ;;  %v1071_v63 = vmax.f32 %v1033_v62, 0.0 }
 0x15f   : > { %v1744_v37 = vpop.f32.mrf.mxu0 }
 0x160   : > { %v1745_v5 = vadd.f32 %v1744_v37, %v1743_v19  ;;  %1886 = vmatprep.mubr.f32.mxu1 %v1071_v63  ;;  %v1038_v35 = vadd.f32 %v1832_v12, %v893_v0  ;;  %v1674_v12 = vadd.f32 %v2895_v10, %v2894_v42 }
 0x161   : > { %v1746_v40 = vpop.f32.mrf.mxu0 }
 0x162   : > { %v898_v4 = vadd.f32 %v1745_v5, %v753_v1  ;;  %v1072_v50 = vmax.f32 %v1038_v35, 0.0  ;;  %v768_v16 = vadd.f32 %v1674_v12, %v623_v32 }
 0x163   : > { %v1747_v43 = vpop.f32.mrf.mxu0 }
 0x164   : > { %v1748_v45 = vadd.f32 %v1747_v43, %v1746_v40  ;;  %v1043_v25 = vadd.f32 %v1042_v2, %v898_v4  ;;  %1887 = vmatmul.mubr.f32.gmra.mxu1 %v1072_v50 }
 0x165   : > { %v1749_v54 = vpop.f32.mrf.mxu0 }
 0x166   : > { %v903_v55 = vadd.f32 %v1748_v45, %v758_v6  ;;  %v1073_v57 = vmax.f32 %v1043_v25, 0.0 }
 0x167   : > { %v1750_v13 = vpop.f32.mrf.mxu0 }
 0x168   : > { %v1751_v44 = vadd.f32 %v1750_v13, %v1749_v54  ;;  %1889 = vmatprep.mubr.f32.mxu1 %v1073_v57  ;;  %v1048_v23 = vadd.f32 %v1835_v21, %v903_v55 }
 0x169   : > { %v1752_v29 = vpop.f32.mrf.mxu0 }
 0x16a   : > { %v908_v59 = vadd.f32 %v1751_v44, %v763_v11  ;;  %v1074_v61 = vmax.f32 %v1048_v23, 0.0 }
 0x16b   : > { %v1753_v14 = vpop.f32.mrf.mxu0 }
 0x16c   : > { %v1754_v15 = vadd.f32 %v1753_v14, %v1752_v29  ;;  %v1053_v17 = vadd.f32 %v1052_v30, %v908_v59  ;;  %1890 = vmatmul.mubr.f32.gmra.mxu1 %v1074_v61 }
 0x16e   : > { %v913_v18 = vadd.f32 %v1754_v15, %v768_v16  ;;  %v1075_v46 = vmax.f32 %v1053_v17, 0.0 }
 0x170   : > { %1892 = vmatprep.mubr.f32.mxu1 %v1075_v46  ;;  %v1058_v58 = vadd.f32 %v1838_v56, %v913_v18 }
 0x172   : > { %v1076_v34 = vmax.f32 %v1058_v58, 0.0  ;;  %v1371_v58 = vld [vmem:[%s2759_s6 + $0x8] sm:$0xff] }
 0x174   : > { %1893 = vmatmul.mubr.f32.gmra.mxu1 %v1076_v34 }
 0x1fc   : > { %v1873_v20 = vpop.f32.mrf.mxu1 }
 0x1fd   : > { %v2717_v22 = vadd.f32 %v1873_v20, %v2714_v27 }
 0x1fe   : > { %v1147_v47 = vpop.f32.mrf.mxu1 }
 0x1ff   : > { %v1227_v49 = vand.u32 2147483647, %v2717_v22  ;;  %v2721_v31 = vadd.f32 %v1147_v47, %v2714_v27  ;;  %vm1323_vm1 = vcmp.ge.f32.partialorder %v2717_v22, 0.0 }
 0x201   : > { %v1243_v62 = vsub.f32 0.0, %v1227_v49  ;;  %v1226_v19 = vand.u32 2147483647, %v2721_v31  ;;  %vm1322_vm2 = vcmp.ge.f32.partialorder %v2721_v31, 0.0 }
 0x203   : > { %v1260_v21 = vmul.f32 1.442695, %v1243_v62  ;;  %v1242_v0 = vsub.f32 0.0, %v1226_v19  ;;  %v1370_v19 = vld [vmem:[%s2759_s6] sm:$0xff] }
 0x204   : > { %v1876_v63 = vpop.f32.mrf.mxu1 }
 0x205   : > { %1904 = vpow2.f32 %v1260_v21  ;;  %v1258_v1 = vmul.f32 1.442695, %v1242_v0  ;;  %v2725_v28 = vadd.f32 %v1876_v63, %v2714_v27 }
 0x206   : > { %v1157_v26 = vpop.f32.mrf.mxu1 }
 0x207   : > { %1906 = vpow2.f32 %v1258_v1  ;;  %v1229_v36 = vand.u32 2147483647, %v2725_v28  ;;  %v2729_v37 = vadd.f32 %v1157_v26, %v2714_v27  ;;  %vm1325_vm3 = vcmp.ge.f32.partialorder %v2725_v28, 0.0 }
 0x209   : > { %v1245_v51 = vsub.f32 0.0, %v1229_v36  ;;  %v1228_v24 = vand.u32 2147483647, %v2729_v37  ;;  %vm1324_vm4 = vcmp.ge.f32.partialorder %v2729_v37, 0.0 }
 0x20b   : > { %v1264_v53 = vmul.f32 1.442695, %v1245_v51  ;;  %v1244_v3 = vsub.f32 0.0, %v1228_v24 }
 0x20c   : > { %v1879_v5 = vpop.f32.mrf.mxu1 }
 0x20d   : > { %1908 = vpow2.f32 %v1264_v53  ;;  %v1262_v35 = vmul.f32 1.442695, %v1244_v3  ;;  %v2733_v40 = vadd.f32 %v1879_v5, %v2714_v27 }
 0x20e   : > { %v1167_v2 = vpop.f32.mrf.mxu1 }
 0x20f   : > { %1910 = vpow2.f32 %v1262_v35  ;;  %v1231_v4 = vand.u32 2147483647, %v2733_v40  ;;  %v2737_v50 = vadd.f32 %v1167_v2, %v2714_v27  ;;  %v1373_v2 = vld [vmem:[%s2759_s6 + $0x18] sm:$0xff]  ;;  %vm1327_vm5 = vcmp.ge.f32.partialorder %v2733_v40, 0.0 }
 0x211   : > { %v1247_v52 = vsub.f32 0.0, %v1231_v4  ;;  %v1230_v38 = vand.u32 2147483647, %v2737_v50  ;;  %vm1326_vm6 = vcmp.ge.f32.partialorder %v2737_v50, 0.0 }
 0x212   : > { %v1905_v39 = vpop.eup %1904 }
 0x213   : > { %v1291_v41 = vadd.f32 1.0, %v1905_v39  ;;  %v1268_v43 = vmul.f32 1.442695, %v1247_v52  ;;  %v1246_v6 = vsub.f32 0.0, %v1230_v38 }
 0x214   : > { %v1907_v8 = vpop.eup %1906  ;;  %v1882_v7 = vpop.f32.mrf.mxu1 }
 0x215   : > { %1912 = vrcp.f32 %v1291_v41  ;;  %v1290_v9 = vadd.f32 1.0, %v1907_v8  ;;  %v1266_v45 = vmul.f32 1.442695, %v1246_v6  ;;  %v2741_v25 = vadd.f32 %v1882_v7, %v2714_v27  ;;  %v1372_v7 = vld [vmem:[%s2759_s6 + $0x10] sm:$0xff] }
 0x216   : > { %1914 = vpow2.f32 %v1268_v43  ;;  %v1177_v54 = vpop.f32.mrf.mxu1 }
 0x217   : > { %1916 = vrcp.f32 %v1290_v9  ;;  %v1233_v56 = vand.u32 2147483647, %v2741_v25  ;;  %v2745_v55 = vadd.f32 %v1177_v54, %v2714_v27  ;;  %vm1329_vm7 = vcmp.ge.f32.partialorder %v2741_v25, 0.0 }
 0x218   : > { %1918 = vpow2.f32 %v1266_v45 }
 0x219   : > { %v1249_v57 = vsub.f32 0.0, %v1233_v56  ;;  %v1232_v11 = vand.u32 2147483647, %v2745_v55  ;;  %vm1328_vm8 = vcmp.ge.f32.partialorder %v2745_v55, 0.0 }
 0x21a   : > { %v1909_v13 = vpop.eup %1908 }
 0x21b   : > { %v1293_v32 = vadd.f32 1.0, %v1909_v13  ;;  %v1272_v42 = vmul.f32 1.442695, %v1249_v57  ;;  %v1248_v10 = vsub.f32 0.0, %v1232_v11 }
 0x21c   : > { %v1911_v12 = vpop.eup %1910  ;;  %v1885_v44 = vpop.f32.mrf.mxu1 }
 0x21d   : > { %1920 = vrcp.f32 %v1293_v32  ;;  %v1292_v23 = vadd.f32 1.0, %v1911_v12  ;;  %v1270_v29 = vmul.f32 1.442695, %v1248_v10  ;;  %v2750_v30 = vadd.f32 %v1885_v44, %v2714_v27 }
 0x21e   : > { %1922 = vpow2.f32 %v1272_v42  ;;  %v1187_v59 = vpop.f32.mrf.mxu1 }
 0x21f   : > { %1924 = vrcp.f32 %v1292_v23  ;;  %v1235_v61 = vand.u32 2147483647, %v2750_v30  ;;  %v2754_v14 = vadd.f32 %v1187_v59, %v2714_v27  ;;  %vm1331_vm9 = vcmp.ge.f32.partialorder %v2750_v30, 0.0 }
 0x220   : > { %1926 = vpow2.f32 %v1270_v29 }
 0x221   : > { %v1251_v16 = vsub.f32 0.0, %v1235_v61  ;;  %v1234_v15 = vand.u32 2147483647, %v2754_v14  ;;  %v1375_v61 = vld [vmem:[%s2759_s6 + $0x28] sm:$0xff]  ;;  %vm1330_vm10 = vcmp.ge.f32.partialorder %v2754_v14, 0.0 }
 0x222   : > { %v1913_v17 = vpop.eup %1912 }
 0x223   : > { %v2762_v18 = vpop.eup %1914  ;;  %v1339_v46 = vmul.f32 %v1913_v17, %v1905_v39  ;;  %v1276_v34 = vmul.f32 1.442695, %v1251_v16  ;;  %v1250_v60 = vsub.f32 0.0, %v1234_v15 }
 0x224   : > { %v1917_v33 = vpop.eup %1916  ;;  %v1295_v48 = vadd.f32 1.0, %v2762_v18  ;;  %v1888_v20 = vpop.f32.mrf.mxu1 }
 0x225   : > { %v2768_v47 = vpop.eup %1918  ;;  %v1355_v49 = vsel %vm1323_vm1, %v1913_v17, %v1339_v46  ;;  %v1338_v62 = vmul.f32 %v1917_v33, %v1907_v8  ;;  %1928 = vpow2.f32 %v1276_v34  ;;  %v1274_v21 = vmul.f32 1.442695, %v1250_v60 }
 0x226   : > { %v1387_v22 = vmul.f32 %v1371_v58, %v1355_v49  ;;  %1930 = vrcp.f32 %v1295_v48  ;;  %v1294_v31 = vadd.f32 1.0, %v2768_v47  ;;  %v2778_v0 = vadd.f32 %v1888_v20, %v2714_v27  ;;  %v1197_v63 = vpop.f32.mrf.mxu1 }
 0x227   : > { %v1354_v1 = vsel %vm1322_vm2, %v1917_v33, %v1338_v62  ;;  %1932 = vpow2.f32 %v1274_v21  ;;  %v2781_v26 = vadd.f32 %v1197_v63, %v2714_v27  ;;  %v1374_v33 = vld [vmem:[%s2759_s6 + $0x20] sm:$0xff] }
 0x228   : > { %1403 = vst [vmem:[%s2773_s9 + $0x8] sm:$0xff] %v1387_v22  ;;  %v1386_v36 = vmul.f32 %v1370_v19, %v1354_v1  ;;  %1934 = vrcp.f32 %v1294_v31  ;;  %v1237_v51 = vand.u32 2147483647, %v2778_v0  ;;  %v1377_v1 = vld [vmem:[%s2759_s6 + $0x38] sm:$0xff]  ;;  %vm1333_vm11 = vcmp.ge.f32.partialorder %v2778_v0, 0.0 }
 0x229   : > { %v1236_v24 = vand.u32 2147483647, %v2781_v26  ;;  %vm1332_vm12 = vcmp.ge.f32.partialorder %v2781_v26, 0.0 }
 0x22a   : > { %v1921_v53 = vpop.eup %1920  ;;  %1402 = vst [vmem:[%s2773_s9] sm:$0xff] %v1386_v36  ;;  %v1253_v3 = vsub.f32 0.0, %v1237_v51 }
 0x22b   : > { %v2787_v5 = vpop.eup %1922  ;;  %v1341_v35 = vmul.f32 %v1921_v53, %v1909_v13  ;;  %v1252_v4 = vsub.f32 0.0, %v1236_v24 }
 0x22c   : > { %v1925_v52 = vpop.eup %1924  ;;  %v1297_v38 = vadd.f32 1.0, %v2787_v5  ;;  %v1280_v39 = vmul.f32 1.442695, %v1253_v3  ;;  %v1891_v41 = vpop.f32.mrf.mxu1 }
 0x22d   : > { %v2792_v43 = vpop.eup %1926  ;;  %v1357_v6 = vsel %vm1325_vm3, %v1921_v53, %v1341_v35  ;;  %v1340_v8 = vmul.f32 %v1925_v52, %v1911_v12  ;;  %v1278_v9 = vmul.f32 1.442695, %v1252_v4  ;;  %v2796_v45 = vadd.f32 %v1891_v41, %v2714_v27  ;;  %v1376_v35 = vld [vmem:[%s2759_s6 + $0x30] sm:$0xff] }
 0x22e   : > { %v1389_v54 = vmul.f32 %v1373_v2, %v1357_v6  ;;  %1936 = vrcp.f32 %v1297_v38  ;;  %v1296_v28 = vadd.f32 1.0, %v2792_v43  ;;  %v1207_v56 = vpop.f32.mrf.mxu1 }
 0x22f   : > { %v1356_v57 = vsel %vm1324_vm4, %v1925_v52, %v1340_v8  ;;  %1938 = vpow2.f32 %v1280_v39  ;;  %v1239_v11 = vand.u32 2147483647, %v2796_v45  ;;  %v2803_v32 = vadd.f32 %v1207_v56, %v2714_v27 }
 0x230   : > { %1405 = vst [vmem:[%s2773_s9 + $0x18] sm:$0xff] %v1389_v54  ;;  %v1388_v13 = vmul.f32 %v1372_v7, %v1356_v57  ;;  %1940 = vrcp.f32 %v1296_v28  ;;  %v1378_v54 = vld [vmem:[%s2759_s6 + $0x40] sm:$0xff]  ;;  %vm1335_vm13 = vcmp.ge.f32.partialorder %v2796_v45, 0.0 }
 0x231   : > { %1942 = vpow2.f32 %v1278_v9  ;;  %v1255_v42 = vsub.f32 0.0, %v1239_v11  ;;  %v1238_v37 = vand.u32 2147483647, %v2803_v32  ;;  %vm1334_vm14 = vcmp.ge.f32.partialorder %v2803_v32, 0.0 }
 0x232   : > { %v1929_v10 = vpop.eup %1928  ;;  %1404 = vst [vmem:[%s2773_s9 + $0x10] sm:$0xff] %v1388_v13 }
 0x233   : > { %v1931_v12 = vpop.eup %1930  ;;  %v1299_v44 = vadd.f32 1.0, %v1929_v10  ;;  %v1284_v23 = vmul.f32 1.442695, %v1255_v42  ;;  %v1254_v16 = vsub.f32 0.0, %v1238_v37 }
 0x234   : > { %v2807_v29 = vpop.eup %1932  ;;  %v1343_v59 = vmul.f32 %v1931_v12, %v2762_v18  ;;  %v1894_v15 = vpop.f32.mrf.mxu1 }
 0x235   : > { %v1935_v17 = vpop.eup %1934  ;;  %1944 = vrcp.f32 %v1299_v44  ;;  %v1298_v46 = vadd.f32 1.0, %v2807_v29  ;;  %v2814_v58 = vadd.f32 %v1894_v15, %v2714_v27  ;;  %v1282_v18 = vmul.f32 1.442695, %v1254_v16 }
 0x236   : > { %v1359_v34 = vsel %vm1327_vm5, %v1931_v12, %v1343_v59  ;;  %v1342_v60 = vmul.f32 %v1935_v17, %v2768_v47  ;;  %1946 = vpow2.f32 %v1284_v23  ;;  %v1217_v48 = vpop.f32.mrf.mxu1  ;;  %v1381_v12 = vld [vmem:[%s2759_s6 + $0x58] sm:$0xff]  ;;  %v1380_v59 = vld [vmem:[%s2759_s6 + $0x50] sm:$0xff] }
 0x237   : > { %v1391_v20 = vmul.f32 %v1375_v61, %v1359_v34  ;;  %1948 = vrcp.f32 %v1298_v46  ;;  %v1241_v40 = vand.u32 2147483647, %v2814_v58  ;;  %v2821_v62 = vadd.f32 %v1217_v48, %v2714_v27  ;;  %v1383_v34 = vld [vmem:[%s2759_s6 + $0x68] sm:$0xff] }
 0x238   : > { %v1358_v49 = vsel %vm1326_vm6, %v1935_v17, %v1342_v60  ;;  %1950 = vpow2.f32 %v1282_v18  ;;  %v1382_v18 = vld [vmem:[%s2759_s6 + $0x60] sm:$0xff]  ;;  %vm1337_vm15 = vcmp.ge.f32.partialorder %v2814_v58, 0.0 }
 0x239   : > { %1407 = vst [vmem:[%s2773_s9 + $0x28] sm:$0xff] %v1391_v20  ;;  %v1390_v19 = vmul.f32 %v1374_v33, %v1358_v49  ;;  %v1257_v47 = vsub.f32 0.0, %v1241_v40  ;;  %v1240_v21 = vand.u32 2147483647, %v2821_v62  ;;  %vm1336_vm0 = vcmp.ge.f32.partialorder %v2821_v62, 0.0 }
 0x23b   : > { %v1937_v22 = vpop.eup %1936  ;;  %1406 = vst [vmem:[%s2773_s9 + $0x20] sm:$0xff] %v1390_v19  ;;  %v1288_v31 = vmul.f32 1.442695, %v1257_v47  ;;  %v1256_v36 = vsub.f32 0.0, %v1240_v21  ;;  %v1385_v19 = vld [vmem:[%s2759_s6 + $0x78] sm:$0xff] }
 0x23c   : > { %v1939_v63 = vpop.eup %1938  ;;  %v1345_v50 = vmul.f32 %v1937_v22, %v2787_v5 }
 0x23d   : > { %v1941_v51 = vpop.eup %1940  ;;  %v1301_v27 = vadd.f32 1.0, %v1939_v63  ;;  %1952 = vpow2.f32 %v1288_v31  ;;  %v1286_v2 = vmul.f32 1.442695, %v1256_v36  ;;  %v1384_v31 = vld [vmem:[%s2759_s6 + $0x70] sm:$0xff] }
 0x23e   : > { %v1943_v24 = vpop.eup %1942  ;;  %v1361_v53 = vsel %vm1329_vm7, %v1937_v22, %v1345_v50  ;;  %v1344_v3 = vmul.f32 %v1941_v51, %v2792_v43  ;;  %v1379_v43 = vld [vmem:[%s2759_s6 + $0x48] sm:$0xff] }
 0x23f   : > { %v1393_v4 = vmul.f32 %v1377_v1, %v1361_v53  ;;  %1954 = vrcp.f32 %v1301_v27  ;;  %v1300_v5 = vadd.f32 1.0, %v1943_v24 }
 0x240   : > { %v1360_v52 = vsel %vm1328_vm8, %v1941_v51, %v1344_v3  ;;  %1956 = vpow2.f32 %v1286_v2 }
 0x241   : > { %1409 = vst [vmem:[%s2773_s9 + $0x38] sm:$0xff] %v1393_v4  ;;  %v1392_v25 = vmul.f32 %v1376_v35, %v1360_v52  ;;  %1958 = vrcp.f32 %v1300_v5 }
 0x242   : > { %v1945_v38 = vpop.eup %1944 }
 0x243   : > { %v1947_v39 = vpop.eup %1946  ;;  %1408 = vst [vmem:[%s2773_s9 + $0x30] sm:$0xff] %v1392_v25  ;;  %v1347_v41 = vmul.f32 %v1945_v38, %v1929_v10 }
 0x244   : > { %v1949_v6 = vpop.eup %1948  ;;  %v1303_v8 = vadd.f32 1.0, %v1947_v39 }
 0x245   : > { %v1951_v55 = vpop.eup %1950  ;;  %v1363_v7 = vsel %vm1331_vm9, %v1945_v38, %v1347_v41  ;;  %v1346_v9 = vmul.f32 %v1949_v6, %v2807_v29 }
 0x246   : > { %v1395_v28 = vmul.f32 %v1379_v43, %v1363_v7  ;;  %1960 = vrcp.f32 %v1303_v8  ;;  %v1302_v56 = vadd.f32 1.0, %v1951_v55 }
 0x247   : > { %v1362_v57 = vsel %vm1330_vm10, %v1949_v6, %v1346_v9 }
 0x248   : > { %1411 = vst [vmem:[%s2773_s9 + $0x48] sm:$0xff] %v1395_v28  ;;  %v1394_v11 = vmul.f32 %v1378_v54, %v1362_v57  ;;  %1962 = vrcp.f32 %v1302_v56 }
 0x24a   : > { %v1953_v13 = vpop.eup %1952  ;;  %1410 = vst [vmem:[%s2773_s9 + $0x40] sm:$0xff] %v1394_v11 }
 0x24b   : > { %v1305_v30 = vadd.f32 1.0, %v1953_v13 }
 0x24c   : > { %v1955_v42 = vpop.eup %1954 }
 0x24d   : > { %v1957_v10 = vpop.eup %1956  ;;  %v1349_v37 = vmul.f32 %v1955_v42, %v1939_v63  ;;  %1964 = vrcp.f32 %v1305_v30 }
 0x24e   : > { %v1959_v44 = vpop.eup %1958  ;;  %v1304_v14 = vadd.f32 1.0, %v1957_v10 }
 0x24f   : > { %v1365_v23 = vsel %vm1333_vm11, %v1955_v42, %v1349_v37  ;;  %v1348_v29 = vmul.f32 %v1959_v44, %v1943_v24 }
 0x250   : > { %v1397_v61 = vmul.f32 %v1381_v12, %v1365_v23  ;;  %1966 = vrcp.f32 %v1304_v14 }
 0x251   : > { %v1364_v16 = vsel %vm1332_vm12, %v1959_v44, %v1348_v29 }
 0x252   : > { %1413 = vst [vmem:[%s2773_s9 + $0x58] sm:$0xff] %v1397_v61  ;;  %v1396_v15 = vmul.f32 %v1380_v59, %v1364_v16 }
 0x253   : > { %v1961_v17 = vpop.eup %1960 }
 0x254   : > { %1412 = vst [vmem:[%s2773_s9 + $0x50] sm:$0xff] %v1396_v15  ;;  %v1351_v46 = vmul.f32 %v1961_v17, %v1947_v39 }
 0x255   : > { %v1963_v0 = vpop.eup %1962 }
 0x256   : > { %v1367_v60 = vsel %vm1335_vm13, %v1961_v17, %v1351_v46  ;;  %v1350_v33 = vmul.f32 %v1963_v0, %v1951_v55 }
 0x257   : > { %v1399_v48 = vmul.f32 %v1383_v34, %v1367_v60 }
 0x258   : > { %v1366_v26 = vsel %vm1334_vm14, %v1963_v0, %v1350_v33 }
 0x259   : > { %1415 = vst [vmem:[%s2773_s9 + $0x68] sm:$0xff] %v1399_v48  ;;  %v1398_v20 = vmul.f32 %v1382_v18, %v1366_v26 }
 0x25a   : > { %v1965_v40 = vpop.eup %1964 }
 0x25b   : > { %1414 = vst [vmem:[%s2773_s9 + $0x60] sm:$0xff] %v1398_v20  ;;  %v1353_v49 = vmul.f32 %v1965_v40, %v1953_v13 }
 0x25d   : > { %v1967_v47 = vpop.eup %1966  ;;  %v1369_v45 = vsel %vm1337_vm15, %v1965_v40, %v1353_v49 }
 0x25e   : > { %v1401_v21 = vmul.f32 %v1385_v19, %v1369_v45  ;;  %v1352_v22 = vmul.f32 %v1967_v47, %v1957_v10 }
 0x260   : > { %1417 = vst [vmem:[%s2773_s9 + $0x78] sm:$0xff] %v1401_v21  ;;  %v1368_v63 = vsel %vm1336_vm0, %v1967_v47, %v1352_v22 }
 0x261   : > { %v1400_v32 = vmul.f32 %v1384_v31, %v1368_v63 }
 0x263   : > { %1416 = vst [vmem:[%s2773_s9 + $0x70] sm:$0xff] %v1400_v32 }
 0x264 PF: > { %s13_s12 = sadd.s32 1, %s1974_s12  }
 0x265   : > { %p10_p4 = scmp.ge.s32.totalorder %s13_s12, 4  }
 0x267   :  { %12 = sbr.rel (!%p10_p4) target bundleno = 1 (0x1), region = 65 }

</bundles_post_ra>
